<compile_context>
chip_gen: v7x
topology: tpu7x:2x2x1
jax: 0.10.0
libtpu: 0.0.40
codegen_flags: <defaults>
</compile_context>

<pallas_src>
import math
import jax
import jax.numpy as jnp
from jax.experimental import pallas as pl
from jax.experimental.pallas import tpu as pltpu

# ----- config (consistent with the module's __init__) -----
HIDDEN = 64                       # __C.HIDDEN_SIZE
MULTI_HEAD = 8                    # __C.MULTI_HEAD
HEAD_DIM = HIDDEN // MULTI_HEAD   # __C.HIDDEN_SIZE_HEAD
FF = 256                          # __C.FF_SIZE
SEQ = 16
BATCH = 2
EPS = 1e-6
MASK_NEG = -10000.0


def _layernorm(t, g, b):
    # MCAN LayerNorm: unbiased std, eps added to the std (not the variance).
    mean = jnp.mean(t, axis=-1, keepdims=True)
    var = jnp.sum((t - mean) ** 2, axis=-1, keepdims=True) * (1.0 / (HIDDEN - 1))
    inv = pl.reciprocal(jnp.sqrt(var) + EPS)   # exact reciprocal on a (rows,1) column
    return g * ((t - mean) * inv) + b


def sa_kernel(x_ref, bias_ref, wa_ref, wmh_ref, w2_ref, vec_ref, o_ref):
    """Processes one block of R = batches_per_block * SEQ rows of the folded (B*S, H) input."""
    x = x_ref[...]                                  # (R, H)
    bias = bias_ref[0]                              # (R, R) additive mask: 0 or -1e4

    # --- unpack packed parameters (static slices) ---
    w1 = wa_ref[:, :FF]                             # (H, FF)
    w_qkv = wa_ref[:, FF:FF + 3 * HIDDEN]           # (H, 3H); cols = [q*scale | k | v]
    b_qkv = vec_ref[0:1, 0:3 * HIDDEN]              # (1, 3H)
    bm = vec_ref[0:1, 3 * HIDDEN:4 * HIDDEN]        # (1, H)
    b1 = vec_ref[1:2, 0:FF]                         # (1, FF)
    b2 = vec_ref[2:3, 0:HIDDEN]                     # (1, H)
    g1 = vec_ref[3:4, 0 * HIDDEN:1 * HIDDEN]
    be1 = vec_ref[3:4, 1 * HIDDEN:2 * HIDDEN]
    g2 = vec_ref[3:4, 2 * HIDDEN:3 * HIDDEN]
    be2 = vec_ref[3:4, 3 * HIDDEN:4 * HIDDEN]

    # --- fused Q/K/V projection: one MXU pass with N = 3*H ---
    qkv = jnp.dot(x, w_qkv, preferred_element_type=jnp.float32) + b_qkv   # (R, 3H)

    # Head-major views (MULTI_HEAD, R, HEAD_DIM), built once; all heads are then
    # handled by a single batched score/softmax/attend pass (no per-head matmul loop,
    # no trailing concat).
    def heads(off):
        return jnp.stack(
            [qkv[:, off + h * HEAD_DIM: off + (h + 1) * HEAD_DIM]
             for h in range(MULTI_HEAD)], axis=0)

    q = heads(0)                 # already scaled by 1/sqrt(HEAD_DIM) via the weights
    k = heads(HIDDEN)
    v = heads(2 * HIDDEN)

    # --- attention: all heads in one batched pass ---
    s = jnp.einsum('hqd,hkd->hqk', q, k,
                   preferred_element_type=jnp.float32)           # (MH, R, R)
    s = s + bias[None, :, :]       # hoisted padding + block-diagonal batch mask
    s = s - jnp.max(s, axis=-1, keepdims=True)
    p = jnp.exp(s)
    # softmax denominator on the EUP approximate-reciprocal path (frees VPU slots)
    p = p * pl.reciprocal(jnp.sum(p, axis=-1, keepdims=True), approx=True)
    # TODO(synk): attention dropout is identity in eval mode; not implemented.
    att = jnp.einsum('hqk,hkd->hqd', p, v,
                     preferred_element_type=jnp.float32)         # (MH, R, DH)

    # --- merge: per-head (DH, H) weight slabs, reduce over heads (no in-kernel transpose) ---
    merged = jnp.einsum('hqd,hdo->hqo', att, wmh_ref[...],
                        preferred_element_type=jnp.float32)      # (MH, R, H)
    merged = jnp.sum(merged, axis=0) + bm                        # (R, H)

    # --- residual + LayerNorm 1 ---   (dropout1 is identity in eval mode)
    y = _layernorm(x + merged, g1, be1)

    # --- FFN: Linear -> ReLU -> Linear ---   (MLP dropout is identity in eval mode)
    h1 = jnp.maximum(jnp.dot(y, w1, preferred_element_type=jnp.float32) + b1, 0.0)
    f = jnp.dot(h1, w2_ref[...], preferred_element_type=jnp.float32) + b2

    # --- residual + LayerNorm 2 ---
    o_ref[...] = _layernorm(y + f, g2, be2)


def pack_params(params):
    """Fuse / reshape the 16 natural parameters into 4 kernel inputs."""
    (wq, bq, wk, bk, wv, bv, wm, bm, w1, b1, w2, b2,
     g1, be1, g2, be2) = params
    scale = 1.0 / math.sqrt(HEAD_DIM)

    # Weight slab: [w1 | wq*scale | wk | wv].  w1 first keeps both slices 128-lane aligned.
    w_a = jnp.concatenate([w1, wq * scale, wk, wv], axis=1)          # (H, FF + 3H)
    wm_h = wm.reshape(MULTI_HEAD, HEAD_DIM, HIDDEN)                  # (MH, DH, H)

    vec_w = max(FF, 4 * HIDDEN)

    def row(parts):
        r = jnp.concatenate(parts, axis=1)
        return jnp.pad(r, ((0, 0), (0, vec_w - r.shape[1])))

    vec = jnp.concatenate([
        row([bq * scale, bk, bv, bm]),     # row 0: qkv biases (q scaled) + merge bias
        row([b1]),                         # row 1: FFN hidden bias
        row([b2]),                         # row 2: FFN output bias
        row([g1, be1, g2, be2]),           # row 3: LayerNorm gains / biases
    ], axis=0).astype(jnp.float32)         # (4, vec_w)
    return w_a, wm_h, w2, vec


def sa_forward(x, mask_f, params, batches_per_block=None):
    """x: (B, S, H) float32; mask_f: (B, S) float32 with 1.0 == padded key position."""
    B, S, H = x.shape
    assert H == HIDDEN
    bpb = B if batches_per_block is None else batches_per_block
    assert B % bpb == 0
    nb = B // bpb             # grid size (1 by default; 2 to use both v7x TensorCores)
    R = bpb * S               # rows handled per grid step

    w_a, wm_h, w2, vec = pack_params(params)

    # Fold batch into the matmul M dimension.
    x2 = x.reshape(B * S, H)

    # Precomputed additive attention bias: -1e4 on padded keys and on cross-batch
    # (off-block-diagonal) entries, 0 elsewhere.  Shape (nb, R, R).
    bib = jnp.arange(R) // S                                    # batch id within a block
    same_batch = bib[:, None] == bib[None, :]                   # (R, R)
    key_ok = mask_f.reshape(nb, R) <= 0.5                       # (nb, R)
    allowed = same_batch[None, :, :] & key_ok[:, None, :]       # (nb, R, R)
    bias = jnp.where(allowed, 0.0, MASK_NEG).astype(jnp.float32)

    out = pl.pallas_call(
        sa_kernel,
        out_shape=jax.ShapeDtypeStruct((B * S, H), jnp.float32),
        grid=(nb,),
        in_specs=[
            pl.BlockSpec((R, H), lambda i: (i, 0)),             # x rows for this block
            pl.BlockSpec((1, R, R), lambda i: (i, 0, 0)),       # additive attention bias
            pl.BlockSpec(w_a.shape, lambda i: (0, 0)),          # fused weight slab
            pl.BlockSpec(wm_h.shape, lambda i: (0, 0, 0)),      # head-shaped merge weight
            pl.BlockSpec(w2.shape, lambda i: (0, 0)),           # FFN second weight
            pl.BlockSpec(vec.shape, lambda i: (0, 0)),          # biases / LayerNorm params
        ],
        out_specs=pl.BlockSpec((R, H), lambda i: (i, 0)),
        compiler_params=pltpu.CompilerParams(
            dimension_semantics=("parallel",)),
    )(x2, bias, w_a, wm_h, w2, vec)
    return out.reshape(B, S, H)


def make_params(key):
    ks = jax.random.split(key, 8)

    def lin(k, fan_in, fan_out):
        bound = 1.0 / math.sqrt(fan_in)
        kw, kb = jax.random.split(k)
        w = jax.random.uniform(kw, (fan_in, fan_out), jnp.float32, -bound, bound)
        b = jax.random.uniform(kb, (1, fan_out), jnp.float32, -bound, bound)
        return w, b

    wq, bq = lin(ks[0], HIDDEN, HIDDEN)
    wk, bk = lin(ks[1], HIDDEN, HIDDEN)
    wv, bv = lin(ks[2], HIDDEN, HIDDEN)
    wm, bm = lin(ks[3], HIDDEN, HIDDEN)
    w1, b1 = lin(ks[4], HIDDEN, FF)
    w2, b2 = lin(ks[5], FF, HIDDEN)
    g1 = jnp.ones((1, HIDDEN), jnp.float32)
    be1 = jnp.zeros((1, HIDDEN), jnp.float32)
    g2 = jnp.ones((1, HIDDEN), jnp.float32)
    be2 = jnp.zeros((1, HIDDEN), jnp.float32)
    return [wq, bq, wk, bk, wv, bv, wm, bm, w1, b1, w2, b2, g1, be1, g2, be2]


def reference_sa(x, mask_f, params):
    (wq, bq, wk, bk, wv, bv, wm, bm, w1, b1, w2, b2, g1, be1, g2, be2) = params
    B, S, H = x.shape

    def ln(t, g, b):
        mean = jnp.mean(t, axis=-1, keepdims=True)
        var = jnp.sum((t - mean) ** 2, axis=-1, keepdims=True) / (H - 1)
        return g * (t - mean) / (jnp.sqrt(var) + EPS) + b

    q = (x @ wq + bq).reshape(B, S, MULTI_HEAD, HEAD_DIM).transpose(0, 2, 1, 3)
    k = (x @ wk + bk).reshape(B, S, MULTI_HEAD, HEAD_DIM).transpose(0, 2, 1, 3)
    v = (x @ wv + bv).reshape(B, S, MULTI_HEAD, HEAD_DIM).transpose(0, 2, 1, 3)
    s = jnp.einsum("bhqd,bhkd->bhqk", q, k) / math.sqrt(HEAD_DIM)
    s = jnp.where(mask_f[:, None, None, :] > 0.5, MASK_NEG, s)
    p = jax.nn.softmax(s, axis=-1)
    att = jnp.einsum("bhqk,bhkd->bhqd", p, v).transpose(0, 2, 1, 3).reshape(B, S, H)
    y = ln(x + (att @ wm + bm), g1, be1)
    f = jnp.maximum(y @ w1 + b1, 0.0) @ w2 + b2
    return ln(y + f, g2, be2)


if __name__ == "__main__":
    key = jax.random.PRNGKey(0)
    kx, kp = jax.random.split(key)

    x = jax.random.normal(kx, (BATCH, SEQ, HIDDEN), jnp.float32)
    # mask: last 4 key positions of batch 1 are padding
    mask_f = jnp.zeros((BATCH, SEQ), jnp.float32)
    mask_f = mask_f.at[1, SEQ - 4:].set(1.0)

    params = make_params(kp)
    ref = reference_sa(x, mask_f, params)

    # Default: batch fully folded, single grid step (best on 1-TC v5e/v6e).
    out = jax.block_until_ready(sa_forward(x, mask_f, params))
    assert out.shape == (BATCH, SEQ, HIDDEN)
    err = float(jnp.max(jnp.abs(out - ref)))
    # Tolerance covers the approximate EUP reciprocal in the softmax denominator.
    assert err < 2e-3, f"max abs err {err}"

    # v7x option: size-2 'parallel' batch grid so both TensorCores get a block.
    out2 = jax.block_until_ready(sa_forward(x, mask_f, params, batches_per_block=1))
    err2 = float(jnp.max(jnp.abs(out2 - ref)))
    assert err2 < 2e-3, f"max abs err (split grid) {err2}"

    print("KERNEL_OK")
</pallas_src>

<mosaic_0001>
module attributes {stable_mosaic.version = 11 : i64} {
  func.func @sa_kernel(%arg0: i32, %arg1: memref<32x64xf32, #tpu.memory_space<vmem>>, %arg2: memref<1x32x32xf32, #tpu.memory_space<vmem>>, %arg3: memref<64x448xf32, #tpu.memory_space<vmem>>, %arg4: memref<8x8x64xf32, #tpu.memory_space<vmem>>, %arg5: memref<256x64xf32, #tpu.memory_space<vmem>>, %arg6: memref<4x256xf32, #tpu.memory_space<vmem>>, %arg7: memref<32x64xf32, #tpu.memory_space<vmem>>) attributes {dimension_semantics = [#tpu.dimension_semantics<parallel>], iteration_bounds = array<i64: 1>, scalar_prefetch = 0 : i64, scratch_operands = 0 : i64, tpu.core_type = #tpu.core_type<tc>, window_params = [{transform_indices = @transform_0, window_bounds = array<i64: 32, 64>}, {transform_indices = @transform_1, window_bounds = array<i64: 1, 32, 32>}, {pipeline_mode = #tpu.pipeline_mode<synchronous>, transform_indices = @transform_2, window_bounds = array<i64: 64, 448>}, {pipeline_mode = #tpu.pipeline_mode<synchronous>, transform_indices = @transform_3, window_bounds = array<i64: 8, 8, 64>}, {pipeline_mode = #tpu.pipeline_mode<synchronous>, transform_indices = @transform_4, window_bounds = array<i64: 256, 64>}, {pipeline_mode = #tpu.pipeline_mode<synchronous>, transform_indices = @transform_5, window_bounds = array<i64: 4, 256>}, {transform_indices = @transform_6, window_bounds = array<i64: 32, 64>}]} {
    %c0 = arith.constant 0 : index
    %c0_0 = arith.constant 0 : index
    %0 = vector.load %arg1[%c0, %c0_0] : memref<32x64xf32, #tpu.memory_space<vmem>>, vector<32x64xf32>
    %c0_1 = arith.constant 0 : index
    %c0_2 = arith.constant 0 : index
    %c0_3 = arith.constant 0 : index
    %1 = vector.load %arg2[%c0_1, %c0_2, %c0_3] : memref<1x32x32xf32, #tpu.memory_space<vmem>>, vector<1x32x32xf32>
    %2 = vector.shape_cast %1 : vector<1x32x32xf32> to vector<32x32xf32>
    %c0_4 = arith.constant 0 : index
    %c0_5 = arith.constant 0 : index
    %3 = vector.load %arg3[%c0_4, %c0_5] : memref<64x448xf32, #tpu.memory_space<vmem>>, vector<64x256xf32>
    %c0_6 = arith.constant 0 : index
    %c256 = arith.constant 256 : index
    %4 = vector.load %arg3[%c0_6, %c256] : memref<64x448xf32, #tpu.memory_space<vmem>>, vector<64x192xf32>
    %c0_7 = arith.constant 0 : index
    %c0_8 = arith.constant 0 : index
    %5 = vector.load %arg6[%c0_7, %c0_8] : memref<4x256xf32, #tpu.memory_space<vmem>>, vector<1x192xf32>
    %c0_9 = arith.constant 0 : index
    %c192 = arith.constant 192 : index
    %6 = vector.load %arg6[%c0_9, %c192] : memref<4x256xf32, #tpu.memory_space<vmem>>, vector<1x64xf32>
    %c1 = arith.constant 1 : index
    %c0_10 = arith.constant 0 : index
    %7 = vector.load %arg6[%c1, %c0_10] : memref<4x256xf32, #tpu.memory_space<vmem>>, vector<1x256xf32>
    %c2 = arith.constant 2 : index
    %c0_11 = arith.constant 0 : index
    %8 = vector.load %arg6[%c2, %c0_11] : memref<4x256xf32, #tpu.memory_space<vmem>>, vector<1x64xf32>
    %c3 = arith.constant 3 : index
    %c0_12 = arith.constant 0 : index
    %9 = vector.load %arg6[%c3, %c0_12] : memref<4x256xf32, #tpu.memory_space<vmem>>, vector<1x64xf32>
    %c3_13 = arith.constant 3 : index
    %c64 = arith.constant 64 : index
    %10 = vector.load %arg6[%c3_13, %c64] : memref<4x256xf32, #tpu.memory_space<vmem>>, vector<1x64xf32>
    %c3_14 = arith.constant 3 : index
    %c128 = arith.constant 128 : index
    %11 = vector.load %arg6[%c3_14, %c128] : memref<4x256xf32, #tpu.memory_space<vmem>>, vector<1x64xf32>
    %c3_15 = arith.constant 3 : index
    %c192_16 = arith.constant 192 : index
    %12 = vector.load %arg6[%c3_15, %c192_16] : memref<4x256xf32, #tpu.memory_space<vmem>>, vector<1x64xf32>
    %cst = arith.constant dense<0.000000e+00> : vector<32x192xf32>
    %13 = tpu.matmul %0, %4, %cst {dimension_numbers = #tpu.dot_dimension_numbers<[1], [0], [0], [1], [0, 0, 1, 1], [], []>} : vector<32x64xf32>, vector<64x192xf32>, vector<32x192xf32> -> vector<32x192xf32>
    %14 = vector.broadcast %5 : vector<1x192xf32> to vector<32x192xf32>
    %15 = arith.addf %13, %14 : vector<32x192xf32>
    %16 = vector.extract_strided_slice %15 {offsets = [0, 0], sizes = [32, 8], strides = [1, 1]} : vector<32x192xf32> to vector<32x8xf32>
    %17 = vector.extract_strided_slice %15 {offsets = [0, 8], sizes = [32, 8], strides = [1, 1]} : vector<32x192xf32> to vector<32x8xf32>
    %18 = vector.extract_strided_slice %15 {offsets = [0, 16], sizes = [32, 8], strides = [1, 1]} : vector<32x192xf32> to vector<32x8xf32>
    %19 = vector.extract_strided_slice %15 {offsets = [0, 24], sizes = [32, 8], strides = [1, 1]} : vector<32x192xf32> to vector<32x8xf32>
    %20 = vector.extract_strided_slice %15 {offsets = [0, 32], sizes = [32, 8], strides = [1, 1]} : vector<32x192xf32> to vector<32x8xf32>
    %21 = vector.extract_strided_slice %15 {offsets = [0, 40], sizes = [32, 8], strides = [1, 1]} : vector<32x192xf32> to vector<32x8xf32>
    %22 = vector.extract_strided_slice %15 {offsets = [0, 48], sizes = [32, 8], strides = [1, 1]} : vector<32x192xf32> to vector<32x8xf32>
    %23 = vector.extract_strided_slice %15 {offsets = [0, 56], sizes = [32, 8], strides = [1, 1]} : vector<32x192xf32> to vector<32x8xf32>
    %24 = vector.shape_cast %16 : vector<32x8xf32> to vector<1x32x8xf32>
    %25 = vector.shape_cast %17 : vector<32x8xf32> to vector<1x32x8xf32>
    %26 = vector.shape_cast %18 : vector<32x8xf32> to vector<1x32x8xf32>
    %27 = vector.shape_cast %19 : vector<32x8xf32> to vector<1x32x8xf32>
    %28 = vector.shape_cast %20 : vector<32x8xf32> to vector<1x32x8xf32>
    %29 = vector.shape_cast %21 : vector<32x8xf32> to vector<1x32x8xf32>
    %30 = vector.shape_cast %22 : vector<32x8xf32> to vector<1x32x8xf32>
    %31 = vector.shape_cast %23 : vector<32x8xf32> to vector<1x32x8xf32>
    %32 = tpu.concatenate %24, %25, %26, %27, %28, %29, %30, %31 in 0 : vector<1x32x8xf32>, vector<1x32x8xf32>, vector<1x32x8xf32>, vector<1x32x8xf32>, vector<1x32x8xf32>, vector<1x32x8xf32>, vector<1x32x8xf32>, vector<1x32x8xf32> -> vector<8x32x8xf32>
    %33 = vector.extract_strided_slice %15 {offsets = [0, 64], sizes = [32, 8], strides = [1, 1]} : vector<32x192xf32> to vector<32x8xf32>
    %34 = vector.extract_strided_slice %15 {offsets = [0, 72], sizes = [32, 8], strides = [1, 1]} : vector<32x192xf32> to vector<32x8xf32>
    %35 = vector.extract_strided_slice %15 {offsets = [0, 80], sizes = [32, 8], strides = [1, 1]} : vector<32x192xf32> to vector<32x8xf32>
    %36 = vector.extract_strided_slice %15 {offsets = [0, 88], sizes = [32, 8], strides = [1, 1]} : vector<32x192xf32> to vector<32x8xf32>
    %37 = vector.extract_strided_slice %15 {offsets = [0, 96], sizes = [32, 8], strides = [1, 1]} : vector<32x192xf32> to vector<32x8xf32>
    %38 = vector.extract_strided_slice %15 {offsets = [0, 104], sizes = [32, 8], strides = [1, 1]} : vector<32x192xf32> to vector<32x8xf32>
    %39 = vector.extract_strided_slice %15 {offsets = [0, 112], sizes = [32, 8], strides = [1, 1]} : vector<32x192xf32> to vector<32x8xf32>
    %40 = vector.extract_strided_slice %15 {offsets = [0, 120], sizes = [32, 8], strides = [1, 1]} : vector<32x192xf32> to vector<32x8xf32>
    %41 = vector.shape_cast %33 : vector<32x8xf32> to vector<1x32x8xf32>
    %42 = vector.shape_cast %34 : vector<32x8xf32> to vector<1x32x8xf32>
    %43 = vector.shape_cast %35 : vector<32x8xf32> to vector<1x32x8xf32>
    %44 = vector.shape_cast %36 : vector<32x8xf32> to vector<1x32x8xf32>
    %45 = vector.shape_cast %37 : vector<32x8xf32> to vector<1x32x8xf32>
    %46 = vector.shape_cast %38 : vector<32x8xf32> to vector<1x32x8xf32>
    %47 = vector.shape_cast %39 : vector<32x8xf32> to vector<1x32x8xf32>
    %48 = vector.shape_cast %40 : vector<32x8xf32> to vector<1x32x8xf32>
    %49 = tpu.concatenate %41, %42, %43, %44, %45, %46, %47, %48 in 0 : vector<1x32x8xf32>, vector<1x32x8xf32>, vector<1x32x8xf32>, vector<1x32x8xf32>, vector<1x32x8xf32>, vector<1x32x8xf32>, vector<1x32x8xf32>, vector<1x32x8xf32> -> vector<8x32x8xf32>
    %50 = vector.extract_strided_slice %15 {offsets = [0, 128], sizes = [32, 8], strides = [1, 1]} : vector<32x192xf32> to vector<32x8xf32>
    %51 = vector.extract_strided_slice %15 {offsets = [0, 136], sizes = [32, 8], strides = [1, 1]} : vector<32x192xf32> to vector<32x8xf32>
    %52 = vector.extract_strided_slice %15 {offsets = [0, 144], sizes = [32, 8], strides = [1, 1]} : vector<32x192xf32> to vector<32x8xf32>
    %53 = vector.extract_strided_slice %15 {offsets = [0, 152], sizes = [32, 8], strides = [1, 1]} : vector<32x192xf32> to vector<32x8xf32>
    %54 = vector.extract_strided_slice %15 {offsets = [0, 160], sizes = [32, 8], strides = [1, 1]} : vector<32x192xf32> to vector<32x8xf32>
    %55 = vector.extract_strided_slice %15 {offsets = [0, 168], sizes = [32, 8], strides = [1, 1]} : vector<32x192xf32> to vector<32x8xf32>
    %56 = vector.extract_strided_slice %15 {offsets = [0, 176], sizes = [32, 8], strides = [1, 1]} : vector<32x192xf32> to vector<32x8xf32>
    %57 = vector.extract_strided_slice %15 {offsets = [0, 184], sizes = [32, 8], strides = [1, 1]} : vector<32x192xf32> to vector<32x8xf32>
    %58 = vector.shape_cast %50 : vector<32x8xf32> to vector<1x32x8xf32>
    %59 = vector.shape_cast %51 : vector<32x8xf32> to vector<1x32x8xf32>
    %60 = vector.shape_cast %52 : vector<32x8xf32> to vector<1x32x8xf32>
    %61 = vector.shape_cast %53 : vector<32x8xf32> to vector<1x32x8xf32>
    %62 = vector.shape_cast %54 : vector<32x8xf32> to vector<1x32x8xf32>
    %63 = vector.shape_cast %55 : vector<32x8xf32> to vector<1x32x8xf32>
    %64 = vector.shape_cast %56 : vector<32x8xf32> to vector<1x32x8xf32>
    %65 = vector.shape_cast %57 : vector<32x8xf32> to vector<1x32x8xf32>
    %66 = tpu.concatenate %58, %59, %60, %61, %62, %63, %64, %65 in 0 : vector<1x32x8xf32>, vector<1x32x8xf32>, vector<1x32x8xf32>, vector<1x32x8xf32>, vector<1x32x8xf32>, vector<1x32x8xf32>, vector<1x32x8xf32>, vector<1x32x8xf32> -> vector<8x32x8xf32>
    "tpu.trace_start"() <{level = 10 : i32, message = "hqd,hkd->hqk"}> : () -> ()
    %cst_17 = arith.constant dense<0.000000e+00> : vector<8x32x32xf32>
    %67 = tpu.matmul %32, %49, %cst_17 {dimension_numbers = #tpu.dot_dimension_numbers<[2], [2], [1], [1], [0, 0, 0, 1, 1, 1], [0], [0]>} : vector<8x32x8xf32>, vector<8x32x8xf32>, vector<8x32x32xf32> -> vector<8x32x32xf32>
    "tpu.trace_stop"() : () -> ()
    %68 = vector.shape_cast %2 : vector<32x32xf32> to vector<1x32x32xf32>
    %69 = vector.broadcast %68 : vector<1x32x32xf32> to vector<8x32x32xf32>
    %70 = arith.addf %67, %69 : vector<8x32x32xf32>
    %cst_18 = arith.constant dense<0xFF800000> : vector<8x32xf32>
    %71 = vector.multi_reduction <maximumf>, %70, %cst_18 [2] : vector<8x32x32xf32> to vector<8x32xf32>
    %72 = vector.shape_cast %71 : vector<8x32xf32> to vector<8x32x1xf32>
    %73 = vector.broadcast %72 : vector<8x32x1xf32> to vector<8x32x32xf32>
    %74 = arith.subf %70, %73 : vector<8x32x32xf32>
    %75 = math.exp %74 : vector<8x32x32xf32>
    %cst_19 = arith.constant dense<0.000000e+00> : vector<8x32xf32>
    %76 = vector.multi_reduction <add>, %75, %cst_19 [2] : vector<8x32x32xf32> to vector<8x32xf32>
    %77 = vector.shape_cast %76 : vector<8x32xf32> to vector<8x32x1xf32>
    %78 = tpu.reciprocal %77 {approx = true} : vector<8x32x1xf32> -> vector<8x32x1xf32>
    %79 = vector.broadcast %78 : vector<8x32x1xf32> to vector<8x32x32xf32>
    %80 = arith.mulf %75, %79 : vector<8x32x32xf32>
    "tpu.trace_start"() <{level = 10 : i32, message = "hqk,hkd->hqd"}> : () -> ()
    %cst_20 = arith.constant dense<0.000000e+00> : vector<8x32x8xf32>
    %81 = tpu.matmul %80, %66, %cst_20 {dimension_numbers = #tpu.dot_dimension_numbers<[2], [1], [1], [2], [0, 0, 0, 1, 1, 2], [0], [0]>} : vector<8x32x32xf32>, vector<8x32x8xf32>, vector<8x32x8xf32> -> vector<8x32x8xf32>
    "tpu.trace_stop"() : () -> ()
    %c0_21 = arith.constant 0 : index
    %c0_22 = arith.constant 0 : index
    %c0_23 = arith.constant 0 : index
    %82 = vector.load %arg4[%c0_21, %c0_22, %c0_23] : memref<8x8x64xf32, #tpu.memory_space<vmem>>, vector<8x8x64xf32>
    "tpu.trace_start"() <{level = 10 : i32, message = "hqd,hdo->hqo"}> : () -> ()
    %cst_24 = arith.constant dense<0.000000e+00> : vector<8x32x64xf32>
    %83 = tpu.matmul %81, %82, %cst_24 {dimension_numbers = #tpu.dot_dimension_numbers<[2], [1], [1], [2], [0, 0, 0, 1, 1, 2], [0], [0]>} : vector<8x32x8xf32>, vector<8x8x64xf32>, vector<8x32x64xf32> -> vector<8x32x64xf32>
    "tpu.trace_stop"() : () -> ()
    %cst_25 = arith.constant dense<0.000000e+00> : vector<32x64xf32>
    %84 = vector.multi_reduction <add>, %83, %cst_25 [0] : vector<8x32x64xf32> to vector<32x64xf32>
    %85 = vector.broadcast %6 : vector<1x64xf32> to vector<32x64xf32>
    %86 = arith.addf %84, %85 : vector<32x64xf32>
    %87 = arith.addf %0, %86 : vector<32x64xf32>
    %cst_26 = arith.constant dense<0.000000e+00> : vector<32xf32>
    %88 = vector.multi_reduction <add>, %87, %cst_26 [1] : vector<32x64xf32> to vector<32xf32>
    %89 = vector.shape_cast %88 : vector<32xf32> to vector<32x1xf32>
    %cst_27 = arith.constant 6.400000e+01 : f32
    %90 = vector.broadcast %cst_27 : f32 to vector<32x1xf32>
    %91 = arith.divf %89, %90 : vector<32x1xf32>
    %92 = vector.broadcast %91 : vector<32x1xf32> to vector<32x64xf32>
    %93 = arith.subf %87, %92 : vector<32x64xf32>
    %94 = arith.mulf %93, %93 : vector<32x64xf32>
    %cst_28 = arith.constant dense<0.000000e+00> : vector<32xf32>
    %95 = vector.multi_reduction <add>, %94, %cst_28 [1] : vector<32x64xf32> to vector<32xf32>
    %96 = vector.shape_cast %95 : vector<32xf32> to vector<32x1xf32>
    %cst_29 = arith.constant 0.0158730168 : f32
    %97 = vector.broadcast %cst_29 : f32 to vector<32x1xf32>
    %98 = arith.mulf %96, %97 : vector<32x1xf32>
    %99 = math.sqrt %98 : vector<32x1xf32>
    %cst_30 = arith.constant 9.99999997E-7 : f32
    %100 = vector.broadcast %cst_30 : f32 to vector<32x1xf32>
    %101 = arith.addf %99, %100 : vector<32x1xf32>
    %102 = tpu.reciprocal %101 : vector<32x1xf32> -> vector<32x1xf32>
    %103 = vector.broadcast %91 : vector<32x1xf32> to vector<32x64xf32>
    %104 = arith.subf %87, %103 : vector<32x64xf32>
    %105 = vector.broadcast %102 : vector<32x1xf32> to vector<32x64xf32>
    %106 = arith.mulf %104, %105 : vector<32x64xf32>
    %107 = vector.broadcast %9 : vector<1x64xf32> to vector<32x64xf32>
    %108 = arith.mulf %107, %106 : vector<32x64xf32>
    %109 = vector.broadcast %10 : vector<1x64xf32> to vector<32x64xf32>
    %110 = arith.addf %108, %109 : vector<32x64xf32>
    %cst_31 = arith.constant dense<0.000000e+00> : vector<32x256xf32>
    %111 = tpu.matmul %110, %3, %cst_31 {dimension_numbers = #tpu.dot_dimension_numbers<[1], [0], [0], [1], [0, 0, 1, 1], [], []>} : vector<32x64xf32>, vector<64x256xf32>, vector<32x256xf32> -> vector<32x256xf32>
    %112 = vector.broadcast %7 : vector<1x256xf32> to vector<32x256xf32>
    %113 = arith.addf %111, %112 : vector<32x256xf32>
    %cst_32 = arith.constant 0.000000e+00 : f32
    %114 = vector.broadcast %cst_32 : f32 to vector<32x256xf32>
    %115 = arith.maximumf %113, %114 : vector<32x256xf32>
    %c0_33 = arith.constant 0 : index
    %c0_34 = arith.constant 0 : index
    %116 = vector.load %arg5[%c0_33, %c0_34] : memref<256x64xf32, #tpu.memory_space<vmem>>, vector<256x64xf32>
    %cst_35 = arith.constant dense<0.000000e+00> : vector<32x64xf32>
    %117 = tpu.matmul %115, %116, %cst_35 {dimension_numbers = #tpu.dot_dimension_numbers<[1], [0], [0], [1], [0, 0, 1, 1], [], []>} : vector<32x256xf32>, vector<256x64xf32>, vector<32x64xf32> -> vector<32x64xf32>
    %118 = vector.broadcast %8 : vector<1x64xf32> to vector<32x64xf32>
    %119 = arith.addf %117, %118 : vector<32x64xf32>
    %120 = arith.addf %110, %119 : vector<32x64xf32>
    %cst_36 = arith.constant dense<0.000000e+00> : vector<32xf32>
    %121 = vector.multi_reduction <add>, %120, %cst_36 [1] : vector<32x64xf32> to vector<32xf32>
    %122 = vector.shape_cast %121 : vector<32xf32> to vector<32x1xf32>
    %cst_37 = arith.constant 6.400000e+01 : f32
    %123 = vector.broadcast %cst_37 : f32 to vector<32x1xf32>
    %124 = arith.divf %122, %123 : vector<32x1xf32>
    %125 = vector.broadcast %124 : vector<32x1xf32> to vector<32x64xf32>
    %126 = arith.subf %120, %125 : vector<32x64xf32>
    %127 = arith.mulf %126, %126 : vector<32x64xf32>
    %cst_38 = arith.constant dense<0.000000e+00> : vector<32xf32>
    %128 = vector.multi_reduction <add>, %127, %cst_38 [1] : vector<32x64xf32> to vector<32xf32>
    %129 = vector.shape_cast %128 : vector<32xf32> to vector<32x1xf32>
    %cst_39 = arith.constant 0.0158730168 : f32
    %130 = vector.broadcast %cst_39 : f32 to vector<32x1xf32>
    %131 = arith.mulf %129, %130 : vector<32x1xf32>
    %132 = math.sqrt %131 : vector<32x1xf32>
    %cst_40 = arith.constant 9.99999997E-7 : f32
    %133 = vector.broadcast %cst_40 : f32 to vector<32x1xf32>
    %134 = arith.addf %132, %133 : vector<32x1xf32>
    %135 = tpu.reciprocal %134 : vector<32x1xf32> -> vector<32x1xf32>
    %136 = vector.broadcast %124 : vector<32x1xf32> to vector<32x64xf32>
    %137 = arith.subf %120, %136 : vector<32x64xf32>
    %138 = vector.broadcast %135 : vector<32x1xf32> to vector<32x64xf32>
    %139 = arith.mulf %137, %138 : vector<32x64xf32>
    %140 = vector.broadcast %11 : vector<1x64xf32> to vector<32x64xf32>
    %141 = arith.mulf %140, %139 : vector<32x64xf32>
    %142 = vector.broadcast %12 : vector<1x64xf32> to vector<32x64xf32>
    %143 = arith.addf %141, %142 : vector<32x64xf32>
    %c0_41 = arith.constant 0 : index
    %c0_42 = arith.constant 0 : index
    %144 = vector.load %arg7[%c0_41, %c0_42] : memref<32x64xf32, #tpu.memory_space<vmem>>, vector<32x64xf32>
    tpu.vector_store %arg7[%c0_41, %c0_42], %143 {strides = array<i32>} : memref<32x64xf32, #tpu.memory_space<vmem>>, vector<32x64xf32>,
    return
  }
  func.func @transform_0(%arg0: i32) -> (i32, i32) {
    %c0_i32 = arith.constant 0 : i32
    %c0_i32_0 = arith.constant 0 : i32
    return %arg0, %c0_i32 : i32, i32
  }
  func.func @transform_1(%arg0: i32) -> (i32, i32, i32) {
    %c0_i32 = arith.constant 0 : i32
    %c0_i32_0 = arith.constant 0 : i32
    %c0_i32_1 = arith.constant 0 : i32
    return %arg0, %c0_i32, %c0_i32_0 : i32, i32, i32
  }
  func.func @transform_2(%arg0: i32) -> (i32, i32) {
    %c0_i32 = arith.constant 0 : i32
    %c0_i32_0 = arith.constant 0 : i32
    %c0_i32_1 = arith.constant 0 : i32
    return %c0_i32, %c0_i32_0 : i32, i32
  }
  func.func @transform_3(%arg0: i32) -> (i32, i32, i32) {
    %c0_i32 = arith.constant 0 : i32
    %c0_i32_0 = arith.constant 0 : i32
    %c0_i32_1 = arith.constant 0 : i32
    %c0_i32_2 = arith.constant 0 : i32
    return %c0_i32, %c0_i32_0, %c0_i32_1 : i32, i32, i32
  }
  func.func @transform_4(%arg0: i32) -> (i32, i32) {
    %c0_i32 = arith.constant 0 : i32
    %c0_i32_0 = arith.constant 0 : i32
    %c0_i32_1 = arith.constant 0 : i32
    return %c0_i32, %c0_i32_0 : i32, i32
  }
  func.func @transform_5(%arg0: i32) -> (i32, i32) {
    %c0_i32 = arith.constant 0 : i32
    %c0_i32_0 = arith.constant 0 : i32
    %c0_i32_1 = arith.constant 0 : i32
    return %c0_i32, %c0_i32_0 : i32, i32
  }
  func.func @transform_6(%arg0: i32) -> (i32, i32) {
    %c0_i32 = arith.constant 0 : i32
    %c0_i32_0 = arith.constant 0 : i32
    return %arg0, %c0_i32 : i32, i32
  }
}

</mosaic_0001>

<bundles_post_ra>
// kernel: tpu_custom_call.1
= control target key start
LH: loop header
LB: loop body
LE: loop exit
PB: predicated region body
PF: predicated region fallthrough
CT: control target
= control target key end

     0   :  { %v4867_v7 = vmov 0.0   ;;  %s6127_s0 = inlined_call_operand.vmem [shape: f32[32,64], index: 0, kind: input, shape index: {}]   ;;  %s6128_s1 = inlined_call_operand.vmem [shape: f32[1,32,32], index: 1, kind: input, shape index: {}]   ;;  %s6129_s2 = inlined_call_operand.vmem [shape: f32[64,448], index: 2, kind: input, shape index: {}]   ;;  %s6130_s3 = inlined_call_operand.vmem [shape: f32[8,8,64], index: 3, kind: input, shape index: {}]   ;;  %s6131_s4 = inlined_call_operand.vmem [shape: f32[256,64], index: 4, kind: input, shape index: {}]   ;;  %s6132_s5 = inlined_call_operand.vmem [shape: f32[4,256], index: 5, kind: input, shape index: {}]   ;;  %s6133_s6 = inlined_call_operand.hbm [shape: f32[32,64], index: 6, kind: output, shape index: {}]  }
   0x1   :  { %v49_v0 = vld [vmem:[%s6129_s2 + $0x18] sm:$0xff]  ;;  %v48_v2 = vld [vmem:[%s6129_s2 + $0x10] sm:$0xff]  ;;  %159 = vmatprep.mubr.f32.mxu0 %v4867_v7 }
   0x2   :  { %v51_v1 = vld [vmem:[%s6129_s2 + $0x38] sm:$0xff]  ;;  %v50_v4 = vld [vmem:[%s6129_s2 + $0x30] sm:$0xff] }
   0x3   :  { %v4293_v3 = vpack.c.bf16 %v51_v1, %v49_v0  ;;  %v53_v5 = vld [vmem:[%s6129_s2 + $0x58] sm:$0xff]  ;;  %v4295_v8 = vpack.c.bf16 %v50_v4, %v48_v2  ;;  %v52_v10 = vld [vmem:[%s6129_s2 + $0x50] sm:$0xff] }
   0x4   :  { %v55_v6 = vld [vmem:[%s6129_s2 + $0x78] sm:$0xff]  ;;  %v54_v11 = vld [vmem:[%s6129_s2 + $0x70] sm:$0xff] }
   0x5   :  { %v4297_v9 = vpack.c.bf16 %v55_v6, %v53_v5  ;;  %v57_v12 = vld [vmem:[%s6129_s2 + $0x98] sm:$0xff]  ;;  %4294 = vmatprep.subr.bf16.mxu0 %v4293_v3  ;;  %v4299_v14 = vpack.c.bf16 %v54_v11, %v52_v10  ;;  %v56_v16 = vld [vmem:[%s6129_s2 + $0x90] sm:$0xff] }
   0x6   :  { %v59_v13 = vld [vmem:[%s6129_s2 + $0xb8] sm:$0xff]  ;;  %4296 = vmatpush1.bf16.msra.mxu0 %v4295_v8  ;;  %v58_v17 = vld [vmem:[%s6129_s2 + $0xb0] sm:$0xff] }
   0x7   :  { %4298 = vmatprep.subr.bf16.mxu0 %v4297_v9  ;;  %v4301_v15 = vpack.c.bf16 %v59_v13, %v57_v12  ;;  %v61_v18 = vld [vmem:[%s6129_s2 + $0xd8] sm:$0xff] }
   0x8   :  { %v63_v19 = vld [vmem:[%s6129_s2 + $0xf8] sm:$0xff] }
   0x9   :  { %11 = vsyncpa [#allocation3], 0  ;;  %v4303_v20 = vpack.c.bf16 %v58_v17, %v56_v16  ;;  %v4305_v21 = vpack.c.bf16 %v63_v19, %v61_v18  ;;  %v60_v22 = vld [vmem:[%s6129_s2 + $0xd0] sm:$0xff]  ;;  %v24_v25 = vld [vmem:[%s6127_s0] sm:$0xff]  ;;  %vm82_vm0 = vcmask 523264   ;;  %v72_v29 = vlaneseq  ;;  %s4868_s15 = smov 120  }
   0xa   :  { %4300 = vmatpush1.bf16.msra.mxu0 %v4299_v14  ;;  %v62_v23 = vld [vmem:[%s6129_s2 + $0xf0] sm:$0xff]  ;;  %v25_v26 = vld [vmem:[%s6127_s0 + $0x8] sm:$0xff]  ;;  %v27_v28 = vld [vmem:[%s6127_s0 + $0x18] sm:$0xff]  ;;  %vm340_vm1 = vcmask 64512   ;;  %s4869_s16 = smov 112   ;;  %s4870_s17 = smov 104  }
   0xb   :  { %4302 = vmatprep.subr.bf16.mxu0 %v4301_v15  ;;  %v4307_v24 = vpack.c.bf16 %v62_v23, %v60_v22  ;;  %v26_v27 = vld [vmem:[%s6127_s0 + $0x10] sm:$0xff]  ;;  %v4982_v30 = vshrl.u32 %v72_v29, 7  ;;  %v64_v32 = vld [vmem:[%s6132_s5] ss:$4 sm:$0x3]  ;;  %s4871_s18 = smov 96   ;;  %vm5154_vm2 = vmpackc.low %vm340_vm1, %vm340_vm1 }
   0xc   :  { %s4872_s19 = smov 88   ;;  %s4873_s20 = smov 80   ;;  %vm1205_vm3 = vcmask 261120  }
   0xd   :  { %v74_v31 = vsub.s32 0, %v4982_v30  ;;  %v78_v34 = vsub.s32 1, %v4982_v30  ;;  %s4874_s21 = smov 72   ;;  %s4875_s22 = smov 64  }
   0xe   :  { %4304 = vmatpush1.bf16.msra.mxu0 %v4303_v20 }
   0xf   :  { %4306 = vmatprep.subr.bf16.mxu0 %v4305_v21  ;;  %v75_v33 = vrot.slane %v64_v32, %v74_v31  ;;  %v79_v38 = vrot.slane %v64_v32, %v78_v34 }
  0x12   :  { %4308 = vmatpush1.bf16.msra.mxu0 %v4307_v24 }
  0x15   :  { %3653 = vmatmul.mubr.msk.f32.vlgmr.msra.gmra.mrb[0].mxu0 %vm82_vm0, %v24_v25 }
  0x16   :  { %165 = vmatprep.mubr.f32.mxu0 %v4867_v7 }
  0x19   :  { %3654 = vmatmul.mubr.msk.f32.gmra.mrb[2].mxu0 %vm82_vm0, %v25_v26 }
  0x1a   :  { %171 = vmatprep.mubr.f32.mxu0 %v4867_v7 }
  0x1d   :  { %3655 = vmatmul.mubr.msk.f32.gmra.mrb[4].mxu0 %vm82_vm0, %v26_v27 }
  0x1e   :  { %177 = vmatprep.mubr.f32.mxu0 %v4867_v7 }
  0x21   :  { %3656 = vmatmul.mubr.msk.f32.gmra.mrb[6].mxu0 %vm82_vm0, %v27_v28 }
  0xe8   :  { %v161_v35 = vpop.f32.mrb[0].mxu0 }
  0xe9   :  { %v162_v36 = vadd.f32 %v161_v35, %v75_v33  ;;  %v163_v37 = vpop.f32.mrb[1].mxu0 }
  0xea   :  { %v164_v42 = vadd.f32 %v163_v37, %v79_v38 }
  0xeb   :  { %188 = vrot.lane.b32.xlu0 %v162_v36, %s4868_s15  ;;  %4013 = vmatprep.mubr.msk.f32.mxu1 %vm340_vm1, %v162_v36 }
  0xec   :  { %v167_v39 = vpop.f32.mrb[2].mxu0 }
  0xed   :  { %v4995_v40 = vadd.f32 %v167_v39, %v75_v33  ;;  %v169_v41 = vpop.f32.mrb[3].mxu0 }
  0xee   :  { %v170_v43 = vadd.f32 %v169_v41, %v79_v38 }
  0xef   :  { %190 = vrot.lane.b32.xlu0 %v4995_v40, %s4868_s15  ;;  %v4529_v56 = vpack.i.bf16 %v4995_v40, %v162_v36 }
  0xf0   :  { %v173_v44 = vpop.f32.mrb[4].mxu0  ;;  %v4999_v45 = vpack.i.bf16 %v170_v43, %v164_v42  ;;  %v5003_v48 = vpack.c.bf16 %v170_v43, %v164_v42 }
  0xf1   :  { %v5001_v46 = vadd.f32 %v173_v44, %v75_v33  ;;  %v175_v47 = vpop.f32.mrb[5].mxu0 }
  0xf2   :  { %v176_v49 = vadd.f32 %v175_v47, %v79_v38 }
  0xf3   :  { %192 = vrot.lane.b32.xlu1 %v5001_v46, %s4868_s15  ;;  %196 = vrot.lane.b32.xlu0 %v162_v36, %s4869_s16 }
  0xf4   :  { %v179_v50 = vpop.f32.mrb[6].mxu0 }
  0xf5   :  { %v5008_v51 = vadd.f32 %v179_v50, %v75_v33  ;;  %v181_v52 = vpop.f32.mrb[7].mxu0 }
  0xf6   :  { %v182_v53 = vadd.f32 %v181_v52, %v79_v38 }
  0xf7   :  { %194 = vrot.lane.b32.xlu1 %v5008_v51, %s4868_s15  ;;  %204 = vrot.lane.b32.xlu0 %v162_v36, %s4870_s17  ;;  %v4539_v57 = vpack.i.bf16 %v5008_v51, %v5001_v46 }
  0xf8   :  { %v5013_v54 = vpack.i.bf16 %v182_v53, %v176_v49  ;;  %v5015_v55 = vpack.c.bf16 %v182_v53, %v176_v49 }
  0xfb   :  { %198 = vrot.lane.b32.xlu1 %v4995_v40, %s4869_s16  ;;  %200 = vrot.lane.b32.xlu0 %v5001_v46, %s4869_s16 }
  0xff   :  { %206 = vrot.lane.b32.xlu1 %v4995_v40, %s4870_s17  ;;  %208 = vrot.lane.b32.xlu0 %v5001_v46, %s4870_s17 }
 0x103   :  { %202 = vrot.lane.b32.xlu1 %v5008_v51, %s4869_s16  ;;  %212 = vrot.lane.b32.xlu0 %v162_v36, %s4871_s18 }
 0x107   :  { %210 = vrot.lane.b32.xlu1 %v5008_v51, %s4870_s17  ;;  %220 = vrot.lane.b32.xlu0 %v162_v36, %s4872_s19 }
 0x10b   :  { %214 = vrot.lane.b32.xlu1 %v4995_v40, %s4871_s18  ;;  %216 = vrot.lane.b32.xlu0 %v5001_v46, %s4871_s18 }
 0x10f   :  { %222 = vrot.lane.b32.xlu1 %v4995_v40, %s4872_s19  ;;  %224 = vrot.lane.b32.xlu0 %v5001_v46, %s4872_s19 }
 0x113   :  { %218 = vrot.lane.b32.xlu1 %v5008_v51, %s4871_s18  ;;  %228 = vrot.lane.b32.xlu0 %v162_v36, %s4873_s20 }
 0x117   :  { %226 = vrot.lane.b32.xlu1 %v5008_v51, %s4872_s19  ;;  %236 = vrot.lane.b32.xlu0 %v162_v36, %s4874_s21 }
 0x11b   :  { %230 = vrot.lane.b32.xlu1 %v4995_v40, %s4873_s20  ;;  %232 = vrot.lane.b32.xlu0 %v5001_v46, %s4873_s20 }
 0x11f   :  { %238 = vrot.lane.b32.xlu1 %v4995_v40, %s4874_s21  ;;  %240 = vrot.lane.b32.xlu0 %v5001_v46, %s4874_s21 }
 0x123   :  { %234 = vrot.lane.b32.xlu1 %v5008_v51, %s4873_s20  ;;  %4530 = vrot.lane.b32.xlu0 %v4529_v56, %s4875_s22 }
 0x127   :  { %242 = vrot.lane.b32.xlu1 %v5008_v51, %s4874_s21  ;;  %4540 = vrot.lane.b32.xlu0 %v4539_v57, %s4875_s22 }
 0x15d   :  { %v189_v58 = vpop.permute.xlu0 %188 }
 0x15e   :  { %4027 = vmatprep.mubr.msk.f32.mxu0 %vm340_vm1, %v189_v58 }
 0x161   :  { %v5063_v59 = vpop.permute.xlu0 %190 }
 0x162   :  { %v4534_v60 = vpack.i.bf16 %v5063_v59, %v189_v58 }
 0x164   :  { %4535 = vrot.lane.b32.xlu1 %v4534_v60, %s4875_s22 }
 0x165   :  { %v5067_v61 = vpop.permute.xlu1 %192  ;;  %v5069_v62 = vpop.permute.xlu0 %196 }
 0x169   :  { %v5071_v63 = vpop.permute.xlu1 %194  ;;  %v5073_v0 = vpop.permute.xlu0 %204 }
 0x16a   :  { %v4544_v1 = vpack.i.bf16 %v5071_v63, %v5067_v61 }
 0x16c   :  { %4545 = vrot.lane.b32.xlu1 %v4544_v1, %s4875_s22 }
 0x16d   :  { %v5078_v2 = vpop.permute.xlu1 %198  ;;  %v5080_v3 = vpop.permute.xlu0 %200 }
 0x16e   :  { %v4549_v4 = vpack.i.bf16 %v5078_v2, %v5069_v62 }
 0x170   :  { %4550 = vrot.lane.b32.xlu0 %v4549_v4, %s4875_s22 }
 0x171   :  { %v5085_v5 = vpop.permute.xlu1 %206  ;;  %v5087_v6 = vpop.permute.xlu0 %208 }
 0x172   :  { %v4554_v8 = vpack.i.bf16 %v5085_v5, %v5073_v0 }
 0x174   :  { %4555 = vrot.lane.b32.xlu1 %v4554_v8, %s4875_s22 }
 0x175   :  { %v5092_v9 = vpop.permute.xlu1 %202  ;;  %v5094_v10 = vpop.permute.xlu0 %212 }
 0x176   :  { %v4559_v11 = vpack.i.bf16 %v5092_v9, %v5080_v3 }
 0x178   :  { %4560 = vrot.lane.b32.xlu0 %v4559_v11, %s4875_s22 }
 0x179   :  { %v5099_v12 = vpop.permute.xlu1 %210  ;;  %v5101_v13 = vpop.permute.xlu0 %220 }
 0x17a   :  { %v4564_v14 = vpack.i.bf16 %v5099_v12, %v5087_v6 }
 0x17c   :  { %4565 = vrot.lane.b32.xlu1 %v4564_v14, %s4875_s22 }
 0x17d   :  { %v5106_v15 = vpop.permute.xlu1 %214  ;;  %v5108_v16 = vpop.permute.xlu0 %216 }
 0x17e   :  { %v4569_v17 = vpack.i.bf16 %v5106_v15, %v5094_v10 }
 0x180   :  { %4570 = vrot.lane.b32.xlu0 %v4569_v17, %s4875_s22 }
 0x181   :  { %v5113_v18 = vpop.permute.xlu1 %222  ;;  %v5115_v19 = vpop.permute.xlu0 %224 }
 0x182   :  { %v4574_v20 = vpack.i.bf16 %v5113_v18, %v5101_v13 }
 0x184   :  { %4575 = vrot.lane.b32.xlu1 %v4574_v20, %s4875_s22 }
 0x185   :  { %v5120_v21 = vpop.permute.xlu1 %218  ;;  %v5122_v22 = vpop.permute.xlu0 %228 }
 0x186   :  { %v4579_v23 = vpack.i.bf16 %v5120_v21, %v5108_v16 }
 0x188   :  { %4580 = vrot.lane.b32.xlu0 %v4579_v23, %s4875_s22 }
 0x189   :  { %v5127_v24 = vpop.permute.xlu1 %226  ;;  %v5129_v25 = vpop.permute.xlu0 %236 }
 0x18a   :  { %v4584_v26 = vpack.i.bf16 %v5127_v24, %v5115_v19 }
 0x18c   :  { %4585 = vrot.lane.b32.xlu1 %v4584_v26, %s4875_s22 }
 0x18d   :  { %v5134_v27 = vpop.permute.xlu1 %230  ;;  %v5136_v28 = vpop.permute.xlu0 %232 }
 0x18e   :  { %v4589_v29 = vpack.i.bf16 %v5134_v27, %v5122_v22 }
 0x190   :  { %4590 = vrot.lane.b32.xlu0 %v4589_v29, %s4875_s22 }
 0x191   :  { %v5141_v32 = vpop.permute.xlu1 %238  ;;  %v5143_v33 = vpop.permute.xlu0 %240 }
 0x192   :  { %v4594_v35 = vpack.i.bf16 %v5141_v32, %v5129_v25 }
 0x194   :  { %4595 = vrot.lane.b32.xlu1 %v4594_v35, %s4875_s22 }
 0x195   :  { %v5148_v36 = vpop.permute.xlu1 %234  ;;  %v4531_v37 = vpop.permute.xlu0 %4530 }
 0x196   :  { %v4599_v38 = vpack.i.bf16 %v5148_v36, %v5136_v28  ;;  %v4533_v39 = vunpack.i.h.bf16 %v4531_v37  ;;  %v4532_v41 = vunpack.i.l.bf16 %v4531_v37 }
 0x198   :  { %4600 = vrot.lane.b32.xlu0 %v4599_v38, %s4875_s22  ;;  %v4309_v43 = vpack.c.bf16 %v4533_v39, %v4532_v41 }
 0x199   :  { %v5159_v44 = vpop.permute.xlu1 %242  ;;  %v4541_v47 = vpop.permute.xlu0 %4540 }
 0x19a   :  { %v4604_v49 = vpack.i.bf16 %v5159_v44, %v5143_v33  ;;  %v4543_v50 = vunpack.i.h.bf16 %v4541_v47  ;;  %v4542_v52 = vunpack.i.l.bf16 %v4541_v47  ;;  %4311 = vmatprep.subr.msk.bf16.mxu1 %vm5154_vm2, %v4309_v43 }
 0x19b   :  { %4314 = vmatpush3.bf16.xpose.msk.msra.mxu1 %vm5154_vm2, %v4309_v43 }
 0x19c   :  { %v4315_v53 = vpack.c.bf16 %v4543_v50, %v4542_v52  ;;  %4620 = vrot.lane.b32.xlu0 %v4999_v45, %s4869_s16  ;;  %4605 = vrot.lane.b32.xlu1 %v4604_v49, %s4875_s22 }
 0x19e   :  { %4317 = vmatprep.subr.msk.bf16.mxu1 %vm5154_vm2, %v4315_v53 }
 0x1a0   :  { %4630 = vrot.lane.b32.xlu0 %v5013_v54, %s4869_s16  ;;  %4610 = vrot.lane.b32.xlu1 %v4999_v45, %s4868_s15 }
 0x1a3   :  { %4320 = vmatpush3.bf16.xpose.msk.msra.mxu1 %vm5154_vm2, %v4315_v53 }
 0x1a4   :  { %4615 = vrot.lane.b32.xlu1 %v5013_v54, %s4868_s15 }
 0x1a8   :  { %4625 = vrot.lane.b32.xlu1 %v4999_v45, %s4870_s17 }
 0x1aa   :  { %4014 = vmatmul.mubr.msk.f32.vlgmr.msra.gmra.mrb[0].mxu1 %vm340_vm1, %v4995_v40 }
 0x1ab   :  { %4016 = vmatprep.mubr.msk.f32.mxu1 %vm340_vm1, %v5001_v46 }
 0x1ac   :  { %4635 = vrot.lane.b32.xlu1 %v5013_v54, %s4870_s17 }
 0x1ae   :  { %4017 = vmatmul.mubr.msk.f32.gmra.mrb[2].mxu1 %vm340_vm1, %v5008_v51 }
 0x1af   :  { %4041 = vmatprep.mubr.msk.f32.mxu1 %vm340_vm1, %v5069_v62 }
 0x1b0   :  { %4640 = vrot.lane.b32.xlu1 %v4999_v45, %s4871_s18 }
 0x1d6   :  { %v4536_v56 = vpop.permute.xlu1 %4535 }
 0x1d7   :  { %v4538_v57 = vunpack.i.h.bf16 %v4536_v56  ;;  %v4537_v58 = vunpack.i.l.bf16 %v4536_v56 }
 0x1d9   :  { %v4321_v60 = vpack.c.bf16 %v4538_v57, %v4537_v58 }
 0x1db   :  { %4323 = vmatprep.subr.msk.bf16.mxu0 %vm5154_vm2, %v4321_v60 }
 0x1dc   :  { %4326 = vmatpush3.bf16.xpose.msk.msra.mxu0 %vm5154_vm2, %v4321_v60 }
 0x1de   :  { %v4546_v40 = vpop.permute.xlu1 %4545 }
 0x1df   :  { %v4548_v46 = vunpack.i.h.bf16 %v4546_v40  ;;  %v4547_v1 = vunpack.i.l.bf16 %v4546_v40 }
 0x1e1   :  { %v4327_v51 = vpack.c.bf16 %v4548_v46, %v4547_v1 }
 0x1e2   :  { %v4551_v4 = vpop.permute.xlu0 %4550 }
 0x1e3   :  { %v4553_v8 = vunpack.i.h.bf16 %v4551_v4  ;;  %v4552_v62 = vunpack.i.l.bf16 %v4551_v4  ;;  %4329 = vmatprep.subr.msk.bf16.mxu0 %vm5154_vm2, %v4327_v51 }
 0x1e4   :  { %4332 = vmatpush3.bf16.xpose.msk.msra.mxu0 %vm5154_vm2, %v4327_v51 }
 0x1e5   :  { %v4333_v11 = vpack.c.bf16 %v4553_v8, %v4552_v62 }
 0x1e6   :  { %v4556_v14 = vpop.permute.xlu1 %4555 }
 0x1e7   :  { %v4558_v17 = vunpack.i.h.bf16 %v4556_v14  ;;  %v4557_v20 = vunpack.i.l.bf16 %v4556_v14  ;;  %4335 = vmatprep.subr.msk.bf16.mxu1 %vm5154_vm2, %v4333_v11 }
 0x1e8   :  { %4338 = vmatpush3.bf16.xpose.msk.msra.mxu1 %vm5154_vm2, %v4333_v11 }
 0x1e9   :  { %v4345_v23 = vpack.c.bf16 %v4558_v17, %v4557_v20 }
 0x1ea   :  { %v4561_v26 = vpop.permute.xlu0 %4560 }
 0x1eb   :  { %v4563_v29 = vunpack.i.h.bf16 %v4561_v26  ;;  %v4562_v35 = vunpack.i.l.bf16 %v4561_v26  ;;  %4028 = vmatmul.mubr.msk.f32.vlgmr.msra.gmra.mrb[8].mxu0 %vm340_vm1, %v5063_v59  ;;  %4347 = vmatprep.subr.msk.bf16.mxu0 %vm5154_vm2, %v4345_v23 }
 0x1ec   :  { %4030 = vmatprep.mubr.msk.f32.mxu0 %vm340_vm1, %v5067_v61  ;;  %4350 = vmatpush3.bf16.xpose.msk.msra.mxu0 %vm5154_vm2, %v4345_v23 }
 0x1ed   :  { %v4339_v37 = vpack.c.bf16 %v4563_v29, %v4562_v35 }
 0x1ee   :  { %v4566_v38 = vpop.permute.xlu1 %4565 }
 0x1ef   :  { %v4568_v39 = vunpack.i.h.bf16 %v4566_v38  ;;  %v4567_v41 = vunpack.i.l.bf16 %v4566_v38  ;;  %4031 = vmatmul.mubr.msk.f32.gmra.mrb[10].mxu0 %vm340_vm1, %v5071_v63  ;;  %4341 = vmatprep.subr.msk.bf16.mxu1 %vm5154_vm2, %v4339_v37  ;;  %v5331_v38 = vld [vmem:[%s6128_s1 + $0x18] sm:$0xff] }
 0x1f0   :  { %4344 = vmatpush3.bf16.xpose.msk.msra.mxu1 %vm5154_vm2, %v4339_v37  ;;  %4055 = vmatprep.mubr.msk.f32.mxu0 %vm340_vm1, %v5073_v0 }
 0x1f1   :  { %v4351_v59 = vpack.c.bf16 %v4568_v39, %v4567_v41  ;;  %v5338_v41 = vld [vmem:[%s6128_s1 + $0x10] sm:$0xff] }
 0x1f2   :  { %v4571_v61 = vpop.permute.xlu0 %4570 }
 0x1f3   :  { %v4573_v43 = vunpack.i.h.bf16 %v4571_v61  ;;  %v4572_v47 = vunpack.i.l.bf16 %v4571_v61  ;;  %4353 = vmatprep.subr.msk.bf16.mxu0 %vm5154_vm2, %v4351_v59 }
 0x1f4   :  { %4356 = vmatpush3.bf16.xpose.msk.msra.mxu0 %vm5154_vm2, %v4351_v59 }
 0x1f5   :  { %v4357_v63 = vpack.c.bf16 %v4573_v43, %v4572_v47 }
 0x1f6   :  { %v4576_v49 = vpop.permute.xlu1 %4575 }
 0x1f7   :  { %v4578_v50 = vunpack.i.h.bf16 %v4576_v49  ;;  %v4577_v52 = vunpack.i.l.bf16 %v4576_v49  ;;  %4042 = vmatmul.mubr.msk.f32.vlgmr.msra.gmra.mrb[4].mxu1 %vm340_vm1, %v5078_v2  ;;  %4359 = vmatprep.subr.msk.bf16.mxu1 %vm5154_vm2, %v4357_v63 }
 0x1f8   :  { %4044 = vmatprep.mubr.msk.f32.mxu1 %vm340_vm1, %v5080_v3  ;;  %4362 = vmatpush3.bf16.xpose.msk.msra.mxu1 %vm5154_vm2, %v4357_v63 }
 0x1f9   :  { %v4369_v0 = vpack.c.bf16 %v4578_v50, %v4577_v52 }
 0x1fa   :  { %v4581_v53 = vpop.permute.xlu0 %4580 }
 0x1fb   :  { %v4583_v56 = vunpack.i.h.bf16 %v4581_v53  ;;  %v4582_v57 = vunpack.i.l.bf16 %v4581_v53  ;;  %4045 = vmatmul.mubr.msk.f32.gmra.mrb[6].mxu1 %vm340_vm1, %v5092_v9  ;;  %4056 = vmatmul.mubr.msk.f32.vlgmr.msra.gmra.mrb[12].mxu0 %vm340_vm1, %v5085_v5 }
 0x1fc   :  { %4371 = vmatprep.subr.msk.bf16.mxu0 %vm5154_vm2, %v4369_v0  ;;  %4058 = vmatprep.mubr.msk.f32.mxu0 %vm340_vm1, %v5087_v6 }
 0x1fd   :  { %v4363_v2 = vpack.c.bf16 %v4583_v56, %v4582_v57  ;;  %4069 = vmatprep.mubr.msk.f32.mxu1 %vm340_vm1, %v5094_v10  ;;  %4374 = vmatpush3.bf16.xpose.msk.msra.mxu0 %vm5154_vm2, %v4369_v0 }
 0x1fe   :  { %v4586_v3 = vpop.permute.xlu1 %4585 }
 0x1ff   :  { %v4588_v58 = vunpack.i.h.bf16 %v4586_v3  ;;  %v4587_v60 = vunpack.i.l.bf16 %v4586_v3  ;;  %4059 = vmatmul.mubr.msk.f32.gmra.mrb[14].mxu0 %vm340_vm1, %v5099_v12  ;;  %4365 = vmatprep.subr.msk.bf16.mxu1 %vm5154_vm2, %v4363_v2 }
 0x200   :  { %4368 = vmatpush3.bf16.xpose.msk.msra.mxu1 %vm5154_vm2, %v4363_v2  ;;  %4083 = vmatprep.mubr.msk.f32.mxu0 %vm340_vm1, %v5101_v13 }
 0x201   :  { %v4375_v5 = vpack.c.bf16 %v4588_v58, %v4587_v60 }
 0x202   :  { %v4591_v6 = vpop.permute.xlu0 %4590 }
 0x203   :  { %v4593_v9 = vunpack.i.h.bf16 %v4591_v6  ;;  %v4592_v10 = vunpack.i.l.bf16 %v4591_v6  ;;  %4377 = vmatprep.subr.msk.bf16.mxu0 %vm5154_vm2, %v4375_v5 }
 0x205   :  { %v4381_v40 = vpack.c.bf16 %v4593_v9, %v4592_v10  ;;  %4380 = vmatpush3.bf16.xpose.msk.msra.mxu0 %vm5154_vm2, %v4375_v5 }
 0x206   :  { %v4596_v12 = vpop.permute.xlu1 %4595 }
 0x207   :  { %v4598_v46 = vunpack.i.h.bf16 %v4596_v12  ;;  %v4597_v1 = vunpack.i.l.bf16 %v4596_v12  ;;  %4070 = vmatmul.mubr.msk.f32.vlgmr.msra.gmra.mrb[8].mxu1 %vm340_vm1, %v5106_v15  ;;  %4383 = vmatprep.subr.msk.bf16.mxu1 %vm5154_vm2, %v4381_v40 }
 0x208   :  { %4072 = vmatprep.mubr.msk.f32.mxu1 %vm340_vm1, %v5108_v16  ;;  %4386 = vmatpush3.bf16.xpose.msk.msra.mxu1 %vm5154_vm2, %v4381_v40 }
 0x209   :  { %v4393_v13 = vpack.c.bf16 %v4598_v46, %v4597_v1 }
 0x20a   :  { %v4601_v51 = vpop.permute.xlu0 %4600 }
 0x20b   :  { %v4603_v4 = vunpack.i.h.bf16 %v4601_v51  ;;  %v4602_v8 = vunpack.i.l.bf16 %v4601_v51  ;;  %4073 = vmatmul.mubr.msk.f32.gmra.mrb[10].mxu1 %vm340_vm1, %v5120_v21  ;;  %4395 = vmatprep.subr.msk.bf16.mxu0 %vm5154_vm2, %v4393_v13 }
 0x20c   :  { %4084 = vmatmul.mubr.msk.f32.vlgmr.msra.gmra.mrb[16].mxu0 %vm340_vm1, %v5113_v18  ;;  %4097 = vmatprep.mubr.msk.f32.mxu1 %vm340_vm1, %v5122_v22 }
 0x20d   :  { %v4387_v15 = vpack.c.bf16 %v4603_v4, %v4602_v8  ;;  %4086 = vmatprep.mubr.msk.f32.mxu0 %vm340_vm1, %v5115_v19  ;;  %4398 = vmatpush3.bf16.xpose.msk.msra.mxu0 %vm5154_vm2, %v4393_v13 }
 0x20e   :  { %v4606_v16 = vpop.permute.xlu1 %4605 }
 0x20f   :  { %v4608_v62 = vunpack.i.h.bf16 %v4606_v16  ;;  %v4607_v11 = vunpack.i.l.bf16 %v4606_v16  ;;  %4389 = vmatprep.subr.msk.bf16.mxu1 %vm5154_vm2, %v4387_v15 }
 0x210   :  { %4087 = vmatmul.mubr.msk.f32.gmra.mrb[18].mxu0 %vm340_vm1, %v5127_v24  ;;  %4392 = vmatpush3.bf16.xpose.msk.msra.mxu1 %vm5154_vm2, %v4387_v15 }
 0x211   :  { %v4399_v18 = vpack.c.bf16 %v4608_v62, %v4607_v11  ;;  %4111 = vmatprep.mubr.msk.f32.mxu0 %vm340_vm1, %v5129_v25  ;;  %v4621_v25 = vpop.permute.xlu0 %4620 }
 0x212   :  { %v4611_v19 = vpop.permute.xlu1 %4610  ;;  %v4623_v35 = vunpack.i.h.bf16 %v4621_v25  ;;  %v4622_v37 = vunpack.i.l.bf16 %v4621_v25 }
 0x213   :  { %v4613_v21 = vunpack.i.h.bf16 %v4611_v19  ;;  %v4612_v22 = vunpack.i.l.bf16 %v4611_v19  ;;  %4401 = vmatprep.subr.msk.bf16.mxu0 %vm5154_vm2, %v4399_v18 }
 0x215   :  { %4404 = vmatpush3.bf16.xpose.msk.msra.mxu0 %vm5154_vm2, %v4399_v18  ;;  %v4413_v14 = vpack.c.bf16 %v4613_v21, %v4612_v22 }
 0x216   :  { %4406 = vmatprep.subr.bf16.mxu0 %v5003_v48  ;;  %v4616_v24 = vpop.permute.xlu1 %4615 }
 0x217   :  { %v4618_v17 = vunpack.i.h.bf16 %v4616_v24  ;;  %v4617_v20 = vunpack.i.l.bf16 %v4616_v24  ;;  %4098 = vmatmul.mubr.msk.f32.vlgmr.msra.gmra.mrb[12].mxu1 %vm340_vm1, %v5134_v27  ;;  %4414 = vmatprep.subr.bf16.mxu1 %v4413_v14 }
 0x218   :  { %4100 = vmatprep.mubr.msk.f32.mxu1 %vm340_vm1, %v5136_v28  ;;  %4416 = vmatpush3.bf16.msra.mxu1 %v4413_v14  ;;  %v5306_v28 = vpack.c.bf16 %v4623_v35, %v4622_v37 }
 0x219   :  { %v4417_v23 = vpack.c.bf16 %v4618_v17, %v4617_v20 }
 0x21a   :  { %v4626_v26 = vpop.permute.xlu1 %4625 }
 0x21b   :  { %v4628_v29 = vunpack.i.h.bf16 %v4626_v26  ;;  %v4627_v42 = vunpack.i.l.bf16 %v4626_v26  ;;  %4101 = vmatmul.mubr.msk.f32.gmra.mrb[14].mxu1 %vm340_vm1, %v5148_v36  ;;  %4418 = vmatprep.subr.bf16.mxu1 %v4417_v23 }
 0x21c   :  { %4112 = vmatmul.mubr.msk.f32.vlgmr.msra.gmra.mrb[20].mxu0 %vm340_vm1, %v5141_v32  ;;  %4420 = vmatpush3.bf16.msra.mxu1 %v4417_v23  ;;  %v5315_v32 = vld [vmem:[%s6128_s1 + $0x8] sm:$0xff] }
 0x21d   :  { %v5299_v27 = vpack.c.bf16 %v4628_v29, %v4627_v42  ;;  %4114 = vmatprep.mubr.msk.f32.mxu0 %vm340_vm1, %v5143_v33  ;;  %4408 = vmatpush3.bf16.msra.mxu0 %v5003_v48  ;;  %v5320_v48 = vld [vmem:[%s6128_s1] sm:$0xff] }
 0x21e   :  { %4410 = vmatprep.subr.bf16.mxu0 %v5015_v55 }
 0x21f   :  { %4430 = vmatprep.subr.bf16.mxu1 %v5299_v27 }
 0x220   :  { %4115 = vmatmul.mubr.msk.f32.gmra.mrb[22].mxu0 %vm340_vm1, %v5159_v44 }
 0x221   :  { %4412 = vmatpush3.bf16.msra.mxu0 %v5015_v55 }
 0x222   :  { %4422 = vmatprep.subr.bf16.mxu0 %v5306_v28 }
 0x27d   :  { %v4015_v33 = vpop.f32.mrb[0].mxu1 }
 0x27e   :  { %v5323_v36 = vadd.f32 %v4015_v33, %v5315_v32  ;;  %v423_v44 = vpop.f32.mrb[1].mxu1 }
 0x27f   :  { %v5326_v55 = vadd.f32 %v423_v44, %v5320_v48 }
 0x280   :  { %v1209_v39 = vsel %vm1205_vm3, %v5323_v36, -inf }
 0x281   :  { %1210 = vmax.xlane.f32.xlu1 %v1209_v39  ;;  %v4018_v59 = vpop.f32.mrb[2].mxu1  ;;  %v1206_v61 = vsel %vm1205_vm3, %v5326_v55, -inf }
 0x282   :  { %v5343_v43 = vadd.f32 %v4018_v59, %v5331_v38  ;;  %v433_v47 = vpop.f32.mrb[3].mxu1  ;;  %1207 = vmax.xlane.f32.xlu0 %v1206_v61 }
 0x283   :  { %v5346_v63 = vadd.f32 %v433_v47, %v5338_v41 }
 0x284   :  { %v1215_v49 = vsel %vm1205_vm3, %v5343_v43, -inf }
 0x285   :  { %v1212_v50 = vsel %vm1205_vm3, %v5346_v63, -inf }
 0x286   :  { %1213 = vmax.xlane.f32.xlu1 %v1212_v50  ;;  %1216 = vmax.xlane.f32.xlu0 %v1215_v49 }
 0x2be   :  { %v4029_v52 = vpop.f32.mrb[8].mxu0 }
 0x2bf   :  { %v5353_v0 = vadd.f32 %v4029_v52, %v5315_v32  ;;  %v532_v53 = vpop.f32.mrb[9].mxu0 }
 0x2c0   :  { %v5364_v6 = vadd.f32 %v532_v53, %v5320_v48 }
 0x2c1   :  { %v1221_v56 = vsel %vm1205_vm3, %v5353_v0, -inf }
 0x2c2   :  { %v4032_v57 = vpop.f32.mrb[10].mxu0  ;;  %1222 = vmax.xlane.f32.xlu0 %v1221_v56  ;;  %v1218_v4 = vsel %vm1205_vm3, %v5364_v6, -inf }
 0x2c3   :  { %v542_v2 = vpop.f32.mrb[11].mxu0  ;;  %v5374_v51 = vadd.f32 %v4032_v57, %v5331_v38 }
 0x2c4   :  { %v5369_v10 = vadd.f32 %v542_v2, %v5338_v41 }
 0x2c5   :  { %v1227_v18 = vsel %vm1205_vm3, %v5374_v51, -inf }
 0x2c6   :  { %v1224_v16 = vsel %vm1205_vm3, %v5369_v10, -inf }
 0x2ca   :  { %v4043_v3 = vpop.f32.mrb[4].mxu1 }
 0x2cb   :  { %v5358_v58 = vadd.f32 %v4043_v3, %v5315_v32  ;;  %v641_v60 = vpop.f32.mrb[5].mxu1 }
 0x2cc   :  { %v5361_v5 = vadd.f32 %v641_v60, %v5320_v48 }
 0x2cd   :  { %v1233_v9 = vsel %vm1205_vm3, %v5358_v58, -inf }
 0x2ce   :  { %v4046_v40 = vpop.f32.mrb[6].mxu1  ;;  %v4057_v12 = vpop.f32.mrb[12].mxu0  ;;  %1234 = vmax.xlane.f32.xlu0 %v1233_v9  ;;  %v1230_v46 = vsel %vm1205_vm3, %v5361_v5, -inf }
 0x2cf   :  { %v651_v1 = vpop.f32.mrb[7].mxu1  ;;  %v750_v13 = vpop.f32.mrb[13].mxu0  ;;  %1231 = vmax.xlane.f32.xlu1 %v1230_v46  ;;  %v5384_v11 = vadd.f32 %v4046_v40, %v5331_v38  ;;  %v5394_v22 = vadd.f32 %v4057_v12, %v5315_v32 }
 0x2d0   :  { %v5379_v8 = vadd.f32 %v651_v1, %v5338_v41  ;;  %v5389_v19 = vadd.f32 %v750_v13, %v5320_v48 }
 0x2d1   :  { %v1239_v14 = vsel %vm1205_vm3, %v5384_v11, -inf  ;;  %v1245_v26 = vsel %vm1205_vm3, %v5394_v22, -inf }
 0x2d2   :  { %v4060_v15 = vpop.f32.mrb[14].mxu0  ;;  %1219 = vmax.xlane.f32.xlu0 %v1218_v4  ;;  %v1236_v21 = vsel %vm1205_vm3, %v5379_v8, -inf  ;;  %v1242_v17 = vsel %vm1205_vm3, %v5389_v19, -inf }
 0x2d3   :  { %v760_v62 = vpop.f32.mrb[15].mxu0  ;;  %1225 = vmax.xlane.f32.xlu1 %v1224_v16  ;;  %v5414_v39 = vadd.f32 %v4060_v15, %v5331_v38 }
 0x2d4   :  { %v5409_v29 = vadd.f32 %v760_v62, %v5338_v41 }
 0x2d5   :  { %v1251_v53 = vsel %vm1205_vm3, %v5414_v39, -inf }
 0x2d6   :  { %1228 = vmax.xlane.f32.xlu0 %v1227_v18  ;;  %v1248_v47 = vsel %vm1205_vm3, %v5409_v29, -inf }
 0x2d7   :  { %1237 = vmax.xlane.f32.xlu1 %v1236_v21 }
 0x2da   :  { %v4071_v24 = vpop.f32.mrb[8].mxu1  ;;  %1240 = vmax.xlane.f32.xlu0 %v1239_v14 }
 0x2db   :  { %v859_v20 = vpop.f32.mrb[9].mxu1  ;;  %1243 = vmax.xlane.f32.xlu1 %v1242_v17  ;;  %v5404_v23 = vadd.f32 %v4071_v24, %v5315_v32 }
 0x2dc   :  { %v5401_v25 = vadd.f32 %v859_v20, %v5320_v48 }
 0x2dd   :  { %v1257_v59 = vsel %vm1205_vm3, %v5404_v23, -inf }
 0x2de   :  { %v4074_v42 = vpop.f32.mrb[10].mxu1  ;;  %1246 = vmax.xlane.f32.xlu0 %v1245_v26  ;;  %v1254_v35 = vsel %vm1205_vm3, %v5401_v25, -inf }
 0x2df   :  { %v4085_v37 = vpop.f32.mrb[16].mxu0  ;;  %v869_v33 = vpop.f32.mrb[11].mxu1  ;;  %1255 = vmax.xlane.f32.xlu1 %v1254_v35  ;;  %v5424_v52 = vadd.f32 %v4074_v42, %v5331_v38 }
 0x2e0   :  { %v968_v44 = vpop.f32.mrb[17].mxu0  ;;  %v5419_v61 = vadd.f32 %v869_v33, %v5338_v41  ;;  %v5434_v2 = vadd.f32 %v4085_v37, %v5315_v32 }
 0x2e1   :  { %v5429_v56 = vadd.f32 %v968_v44, %v5320_v48  ;;  %v1263_v3 = vsel %vm1205_vm3, %v5424_v52, -inf  ;;  %v5472_v44 = vpop.permute.xlu1 %4635 }
 0x2e2   :  { %1258 = vmax.xlane.f32.xlu0 %v1257_v59  ;;  %v1260_v57 = vsel %vm1205_vm3, %v5419_v61, -inf  ;;  %v1269_v1 = vsel %vm1205_vm3, %v5434_v2, -inf }
 0x2e3   :  { %v4088_v49 = vpop.f32.mrb[18].mxu0  ;;  %1249 = vmax.xlane.f32.xlu1 %v1248_v47  ;;  %v1266_v9 = vsel %vm1205_vm3, %v5429_v56, -inf  ;;  %v5476_v47 = vpop.permute.xlu0 %4630 }
 0x2e4   :  { %v978_v50 = vpop.f32.mrb[19].mxu0  ;;  %v5454_v21 = vadd.f32 %v4088_v49, %v5331_v38 }
 0x2e5   :  { %v5449_v13 = vadd.f32 %v978_v50, %v5338_v41  ;;  %v5474_v59 = vpop.permute.xlu1 %4640 }
 0x2e6   :  { %1252 = vmax.xlane.f32.xlu0 %v1251_v53  ;;  %v1275_v35 = vsel %vm1205_vm3, %v5454_v21, -inf }
 0x2e7   :  { %1261 = vmax.xlane.f32.xlu1 %v1260_v57  ;;  %v1272_v17 = vsel %vm1205_vm3, %v5449_v13, -inf }
 0x2ea   :  { %v4099_v60 = vpop.f32.mrb[12].mxu1  ;;  %1264 = vmax.xlane.f32.xlu0 %v1263_v3 }
 0x2eb   :  { %v1077_v40 = vpop.f32.mrb[13].mxu1  ;;  %1267 = vmax.xlane.f32.xlu1 %v1266_v9  ;;  %v5444_v46 = vadd.f32 %v4099_v60, %v5315_v32 }
 0x2ec   :  { %v5441_v12 = vadd.f32 %v1077_v40, %v5320_v48 }
 0x2ed   :  { %v1281_v14 = vsel %vm1205_vm3, %v5444_v46, -inf }
 0x2ee   :  { %v4102_v4 = vpop.f32.mrb[14].mxu1  ;;  %1270 = vmax.xlane.f32.xlu0 %v1269_v1  ;;  %v1278_v15 = vsel %vm1205_vm3, %v5441_v12, -inf }
 0x2ef   :  { %v4113_v16 = vpop.f32.mrb[20].mxu0  ;;  %v1087_v62 = vpop.f32.mrb[15].mxu1  ;;  %1279 = vmax.xlane.f32.xlu1 %v1278_v15  ;;  %v5464_v42 = vadd.f32 %v4102_v4, %v5331_v38 }
 0x2f0   :  { %v1186_v18 = vpop.f32.mrb[21].mxu0  ;;  %v5459_v24 = vadd.f32 %v1087_v62, %v5338_v41 }
 0x2f1   :  { %v1287_v33 = vsel %vm1205_vm3, %v5464_v42, -inf }
 0x2f2   :  { %1282 = vmax.xlane.f32.xlu0 %v1281_v14  ;;  %v1284_v37 = vsel %vm1205_vm3, %v5459_v24, -inf }
 0x2f3   :  { %v4116_v20 = vpop.f32.mrb[22].mxu0  ;;  %1273 = vmax.xlane.f32.xlu1 %v1272_v17 }
 0x2f4   :  { %v1196_v26 = vpop.f32.mrb[23].mxu0 }
 0x2f6   :  { %1276 = vmax.xlane.f32.xlu0 %v1275_v35 }
 0x2f7   :  { %1285 = vmax.xlane.f32.xlu1 %v1284_v37 }
 0x2fa   :  { %1288 = vmax.xlane.f32.xlu0 %v1287_v33  ;;  %v5500_v33 = vadd.f32 %v4113_v16, %v5315_v32 }
 0x30e   :  { %v1211_v49 = vpop.xlane.xlu1 %1210 }
 0x30f   :  { %v1303_v50 = vsub.f32 %v5323_v36, %v1211_v49  ;;  %v1208_v53 = vpop.xlane.xlu0 %1207 }
 0x310   :  { %v1302_v57 = vsub.f32 %v5326_v55, %v1208_v53 }
 0x311   :  { %v1336_v3 = vmul.f32 1.442695, %v1303_v50  ;;  %v5505_v50 = vadd.f32 %v1196_v26, %v5338_v41 }
 0x312   :  { %v1334_v60 = vmul.f32 1.442695, %v1302_v57 }
 0x313   :  { %4679 = vpow2.f32 %v1336_v3  ;;  %v1214_v9 = vpop.xlane.xlu1 %1213  ;;  %v1217_v40 = vpop.xlane.xlu0 %1216  ;;  %v1296_v32 = vsel %vm1205_vm3, %v5505_v50, -inf }
 0x314   :  { %4681 = vpow2.f32 %v1334_v60  ;;  %v1304_v1 = vsub.f32 %v5346_v63, %v1214_v9  ;;  %v1305_v4 = vsub.f32 %v5343_v43, %v1217_v40  ;;  %v5495_v43 = vadd.f32 %v1186_v18, %v5320_v48 }
 0x315   :  { %v5510_v48 = vadd.f32 %v4116_v20, %v5331_v38  ;;  %v1293_v18 = vsel %vm1205_vm3, %v5500_v33, -inf }
 0x316   :  { %v1338_v15 = vmul.f32 1.442695, %v1304_v1  ;;  %v1340_v62 = vmul.f32 1.442695, %v1305_v4  ;;  %v1290_v53 = vsel %vm1205_vm3, %v5495_v43, -inf }
 0x317   :  { %v1299_v16 = vsel %vm1205_vm3, %v5510_v48, -inf }
 0x318   :  { %4683 = vpow2.f32 %v1338_v15 }
 0x319   :  { %4685 = vpow2.f32 %v1340_v62 }
 0x31d   :  { %v5482_v14 = vpop.eup %4679 }
 0x31e   :  { %v5484_v36 = vpop.eup %4681  ;;  %v1401_v55 = vsel %vm1205_vm3, %v5482_v14, 0.0 }
 0x31f   :  { %1402 = vadd.xlane.f32.xlu0 %v1401_v55  ;;  %v1398_v17 = vsel %vm1205_vm3, %v5484_v36, 0.0 }
 0x320   :  { %1399 = vadd.xlane.f32.xlu1 %v1398_v17 }
 0x322   :  { %v5490_v35 = vpop.eup %4683 }
 0x323   :  { %v5492_v63 = vpop.eup %4685  ;;  %v1404_v37 = vsel %vm1205_vm3, %v5490_v35, 0.0 }
 0x324   :  { %1405 = vadd.xlane.f32.xlu1 %v1404_v37  ;;  %v1407_v49 = vsel %vm1205_vm3, %v5492_v63, 0.0 }
 0x325   :  { %1408 = vadd.xlane.f32.xlu0 %v1407_v49 }
 0x328   :  { %1291 = vmax.xlane.f32.xlu1 %v1290_v53 }
 0x329   :  { %1294 = vmax.xlane.f32.xlu0 %v1293_v18 }
 0x32c   :  { %1297 = vmax.xlane.f32.xlu1 %v1296_v32 }
 0x32d   :  { %1300 = vmax.xlane.f32.xlu0 %v1299_v16 }
 0x33d   :  { %4645 = vrot.lane.b32.xlu1 %v4999_v45, %s4872_s19 }
 0x34f   :  { %v1223_v41 = vpop.xlane.xlu0 %1222 }
 0x350   :  { %v1307_v38 = vsub.f32 %v5353_v0, %v1223_v41 }
 0x352   :  { %v1344_v20 = vmul.f32 1.442695, %v1307_v38 }
 0x354   :  { %4687 = vpow2.f32 %v1344_v20 }
 0x35b   :  { %v1235_v26 = vpop.xlane.xlu0 %1234 }
 0x35c   :  { %v1311_v57 = vsub.f32 %v5358_v58, %v1235_v26  ;;  %v1232_v3 = vpop.xlane.xlu1 %1231 }
 0x35d   :  { %v1310_v40 = vsub.f32 %v5361_v5, %v1232_v3 }
 0x35e   :  { %v5522_v60 = vpop.eup %4687  ;;  %v1352_v9 = vmul.f32 1.442695, %v1311_v57 }
 0x35f   :  { %v1220_v1 = vpop.xlane.xlu0 %1219  ;;  %v1413_v4 = vsel %vm1205_vm3, %v5522_v60, 0.0  ;;  %v1350_v0 = vmul.f32 1.442695, %v1310_v40 }
 0x360   :  { %4689 = vpow2.f32 %v1352_v9  ;;  %v1306_v15 = vsub.f32 %v5364_v6, %v1220_v1  ;;  %v1226_v62 = vpop.xlane.xlu1 %1225  ;;  %1414 = vadd.xlane.f32.xlu0 %v1413_v4 }
 0x361   :  { %v1308_v17 = vsub.f32 %v5369_v10, %v1226_v62 }
 0x362   :  { %v1342_v55 = vmul.f32 1.442695, %v1306_v15 }
 0x363   :  { %v1229_v58 = vpop.xlane.xlu0 %1228  ;;  %v1346_v5 = vmul.f32 1.442695, %v1308_v17 }
 0x364   :  { %4691 = vpow2.f32 %v1342_v55  ;;  %v1309_v37 = vsub.f32 %v5374_v51, %v1229_v58  ;;  %v1238_v49 = vpop.xlane.xlu1 %1237 }
 0x365   :  { %4693 = vpow2.f32 %v1350_v0  ;;  %v1312_v18 = vsub.f32 %v5379_v8, %v1238_v49 }
 0x366   :  { %v1348_v53 = vmul.f32 1.442695, %v1309_v37 }
 0x367   :  { %v1241_v32 = vpop.xlane.xlu0 %1240  ;;  %v1354_v38 = vmul.f32 1.442695, %v1312_v18 }
 0x368   :  { %4695 = vpow2.f32 %v1348_v53  ;;  %v1313_v6 = vsub.f32 %v5384_v11, %v1241_v32  ;;  %v1244_v16 = vpop.xlane.xlu1 %1243 }
 0x369   :  { %4697 = vpow2.f32 %v1346_v5  ;;  %v1314_v20 = vsub.f32 %v5389_v19, %v1244_v16 }
 0x36a   :  { %v5532_v41 = vpop.eup %4689  ;;  %v1356_v10 = vmul.f32 1.442695, %v1313_v6 }
 0x36b   :  { %v1247_v26 = vpop.xlane.xlu0 %1246  ;;  %v1425_v51 = vsel %vm1205_vm3, %v5532_v41, 0.0  ;;  %v1358_v11 = vmul.f32 1.442695, %v1314_v20 }
 0x36c   :  { %4699 = vpow2.f32 %v1356_v10  ;;  %v1315_v57 = vsub.f32 %v5394_v22, %v1247_v26  ;;  %v1256_v8 = vpop.xlane.xlu1 %1255  ;;  %1426 = vadd.xlane.f32.xlu0 %v1425_v51 }
 0x36d   :  { %4701 = vpow2.f32 %v1354_v38  ;;  %v1318_v40 = vsub.f32 %v5401_v25, %v1256_v8 }
 0x36e   :  { %v5538_v3 = vpop.eup %4691  ;;  %v1360_v9 = vmul.f32 1.442695, %v1315_v57 }
 0x36f   :  { %v1259_v1 = vpop.xlane.xlu0 %1258  ;;  %v1410_v19 = vsel %vm1205_vm3, %v5538_v3, 0.0  ;;  %v5543_v4 = vpop.eup %4693  ;;  %v1366_v0 = vmul.f32 1.442695, %v1318_v40 }
 0x370   :  { %4703 = vpow2.f32 %v1360_v9  ;;  %v1319_v15 = vsub.f32 %v5404_v23, %v1259_v1  ;;  %v1250_v62 = vpop.xlane.xlu1 %1249  ;;  %1411 = vadd.xlane.f32.xlu1 %v1410_v19  ;;  %v1422_v25 = vsel %vm1205_vm3, %v5543_v4, 0.0 }
 0x371   :  { %4705 = vpow2.f32 %v1358_v11  ;;  %v1316_v17 = vsub.f32 %v5409_v29, %v1250_v62 }
 0x372   :  { %v5546_v22 = vpop.eup %4695  ;;  %v1368_v55 = vmul.f32 1.442695, %v1319_v15 }
 0x373   :  { %v1253_v58 = vpop.xlane.xlu0 %1252  ;;  %v1419_v37 = vsel %vm1205_vm3, %v5546_v22, 0.0  ;;  %v5553_v49 = vpop.eup %4697  ;;  %v1362_v18 = vmul.f32 1.442695, %v1316_v17 }
 0x374   :  { %4707 = vpow2.f32 %v1368_v55  ;;  %v1317_v23 = vsub.f32 %v5414_v39, %v1253_v58  ;;  %v1262_v5 = vpop.xlane.xlu1 %1261  ;;  %1423 = vadd.xlane.f32.xlu1 %v1422_v25  ;;  %1420 = vadd.xlane.f32.xlu0 %v1419_v37  ;;  %v1416_v16 = vsel %vm1205_vm3, %v5553_v49, 0.0 }
 0x375   :  { %4709 = vpow2.f32 %v1366_v0  ;;  %v1320_v32 = vsub.f32 %v5419_v61, %v1262_v5 }
 0x376   :  { %v5556_v53 = vpop.eup %4699  ;;  %v1364_v29 = vmul.f32 1.442695, %v1317_v23 }
 0x377   :  { %v1265_v6 = vpop.xlane.xlu0 %1264  ;;  %v1431_v38 = vsel %vm1205_vm3, %v5556_v53, 0.0  ;;  %v5563_v10 = vpop.eup %4701  ;;  %v1370_v51 = vmul.f32 1.442695, %v1320_v32 }
 0x378   :  { %4711 = vpow2.f32 %v1364_v29  ;;  %v1321_v39 = vsub.f32 %v5424_v52, %v1265_v6  ;;  %v1268_v20 = vpop.xlane.xlu1 %1267  ;;  %1417 = vadd.xlane.f32.xlu1 %v1416_v16  ;;  %1432 = vadd.xlane.f32.xlu0 %v1431_v38  ;;  %v1428_v8 = vsel %vm1205_vm3, %v5563_v10, 0.0 }
 0x379   :  { %4713 = vpow2.f32 %v1362_v18  ;;  %v1322_v1 = vsub.f32 %v5429_v56, %v1268_v20 }
 0x37a   :  { %v5566_v26 = vpop.eup %4703  ;;  %v1372_v61 = vmul.f32 1.442695, %v1321_v39 }
 0x37b   :  { %v1271_v57 = vpop.xlane.xlu0 %1270  ;;  %v1437_v11 = vsel %vm1205_vm3, %v5566_v26, 0.0  ;;  %v5572_v9 = vpop.eup %4705  ;;  %v1374_v56 = vmul.f32 1.442695, %v1322_v1 }
 0x37c   :  { %4715 = vpow2.f32 %v1372_v61  ;;  %v1323_v52 = vsub.f32 %v5434_v2, %v1271_v57  ;;  %v1280_v40 = vpop.xlane.xlu1 %1279  ;;  %1429 = vadd.xlane.f32.xlu1 %v1428_v8  ;;  %1438 = vadd.xlane.f32.xlu0 %v1437_v11  ;;  %v1434_v55 = vsel %vm1205_vm3, %v5572_v9, 0.0 }
 0x37d   :  { %4717 = vpow2.f32 %v1370_v51  ;;  %v1326_v62 = vsub.f32 %v5441_v12, %v1280_v40 }
 0x37e   :  { %v5576_v19 = vpop.eup %4707  ;;  %v1376_v15 = vmul.f32 1.442695, %v1323_v52 }
 0x37f   :  { %v1283_v0 = vpop.xlane.xlu0 %1282  ;;  %v1449_v17 = vsel %vm1205_vm3, %v5576_v19, 0.0  ;;  %v5583_v58 = vpop.eup %4709  ;;  %v1382_v23 = vmul.f32 1.442695, %v1326_v62 }
 0x380   :  { %v1327_v2 = vsub.f32 %v5444_v46, %v1283_v0  ;;  %v1274_v25 = vpop.xlane.xlu1 %1273  ;;  %1435 = vadd.xlane.f32.xlu1 %v1434_v55  ;;  %1450 = vadd.xlane.f32.xlu0 %v1449_v17  ;;  %4719 = vpow2.f32 %v1376_v15  ;;  %v1446_v18 = vsel %vm1205_vm3, %v5583_v58, 0.0 }
 0x382   :  { %v5586_v37 = vpop.eup %4711  ;;  %v1384_v12 = vmul.f32 1.442695, %v1327_v2 }
 0x383   :  { %v1277_v5 = vpop.xlane.xlu0 %1276  ;;  %v1443_v29 = vsel %vm1205_vm3, %v5586_v37, 0.0  ;;  %v5592_v32 = vpop.eup %4713 }
 0x384   :  { %4721 = vpow2.f32 %v1384_v12  ;;  %v1325_v46 = vsub.f32 %v5454_v21, %v1277_v5  ;;  %v1286_v6 = vpop.xlane.xlu1 %1285  ;;  %1447 = vadd.xlane.f32.xlu1 %v1446_v18  ;;  %1444 = vadd.xlane.f32.xlu0 %v1443_v29  ;;  %v1440_v61 = vsel %vm1205_vm3, %v5592_v32, 0.0 }
 0x385   :  { %4723 = vpow2.f32 %v1374_v56  ;;  %v1328_v16 = vsub.f32 %v5459_v24, %v1286_v6  ;;  %v1324_v24 = vsub.f32 %v5449_v13, %v1274_v25 }
 0x386   :  { %v5596_v38 = vpop.eup %4715  ;;  %4725 = vpow2.f32 %v1382_v23  ;;  %v1380_v39 = vmul.f32 1.442695, %v1325_v46 }
 0x387   :  { %v1386_v20 = vmul.f32 1.442695, %v1328_v16  ;;  %v1289_v51 = vpop.xlane.xlu0 %1288  ;;  %v1455_v57 = vsel %vm1205_vm3, %v5596_v38, 0.0  ;;  %v5602_v8 = vpop.eup %4717  ;;  %v1378_v15 = vmul.f32 1.442695, %v1324_v24 }
 0x388   :  { %v1329_v21 = vsub.f32 %v5464_v42, %v1289_v51  ;;  %1441 = vadd.xlane.f32.xlu1 %v1440_v61  ;;  %1456 = vadd.xlane.f32.xlu0 %v1455_v57  ;;  %4727 = vpow2.f32 %v1380_v39  ;;  %v1452_v52 = vsel %vm1205_vm3, %v5602_v8, 0.0 }
 0x389   :  { %4729 = vpow2.f32 %v1386_v20 }
 0x38a   :  { %v1388_v11 = vmul.f32 1.442695, %v1329_v21  ;;  %v5608_v40 = vpop.eup %4719 }
 0x38b   :  { %v1461_v42 = vsel %vm1205_vm3, %v5608_v40, 0.0 }
 0x38c   :  { %1453 = vadd.xlane.f32.xlu0 %v1452_v52  ;;  %4731 = vpow2.f32 %v1388_v11  ;;  %v4633_v11 = vunpack.i.h.bf16 %v5476_v47  ;;  %v4632_v52 = vunpack.i.l.bf16 %v5476_v47  ;;  %v4643_v47 = vunpack.i.h.bf16 %v5474_v59 }
 0x38d   :  { %4733 = vpow2.f32 %v1378_v15 }
 0x38e   :  { %v5610_v1 = vpop.eup %4721 }
 0x38f   :  { %v5612_v62 = vpop.eup %4723  ;;  %v1473_v13 = vsel %vm1205_vm3, %v5610_v1, 0.0 }
 0x390   :  { %v5618_v0 = vpop.eup %4725  ;;  %1462 = vadd.xlane.f32.xlu0 %v1461_v42  ;;  %1474 = vadd.xlane.f32.xlu1 %v1473_v13  ;;  %v1458_v2 = vsel %vm1205_vm3, %v5612_v62, 0.0 }
 0x391   :  { %v1470_v17 = vsel %vm1205_vm3, %v5618_v0, 0.0 }
 0x392   :  { %v5620_v55 = vpop.eup %4727 }
 0x393   :  { %v5626_v25 = vpop.eup %4729  ;;  %v1467_v23 = vsel %vm1205_vm3, %v5620_v55, 0.0 }
 0x394   :  { %1471 = vadd.xlane.f32.xlu0 %v1470_v17  ;;  %1459 = vadd.xlane.f32.xlu1 %v1458_v2  ;;  %v1476_v56 = vsel %vm1205_vm3, %v5626_v25, 0.0 }
 0x396   :  { %v5632_v12 = vpop.eup %4731 }
 0x397   :  { %v1479_v5 = vsel %vm1205_vm3, %v5632_v12, 0.0  ;;  %v5636_v18 = vpop.eup %4733 }
 0x398   :  { %1477 = vadd.xlane.f32.xlu1 %v1476_v56  ;;  %1468 = vadd.xlane.f32.xlu0 %v1467_v23  ;;  %v1464_v29 = vsel %vm1205_vm3, %v5636_v18, 0.0 }
 0x39c   :  { %1480 = vadd.xlane.f32.xlu0 %v1479_v5  ;;  %v4425_v5 = vpack.c.bf16 %v4633_v11, %v4632_v52 }
 0x3a0   :  { %1465 = vadd.xlane.f32.xlu0 %v1464_v29  ;;  %v4642_v29 = vunpack.i.l.bf16 %v5474_v59 }
 0x3ac   :  { %v1403_v46 = vpop.xlane.xlu0 %1402 }
 0x3ad   :  { %4735 = vrcp.f32 %v1403_v46  ;;  %v1400_v6 = vpop.xlane.xlu1 %1399 }
 0x3ae   :  { %4737 = vrcp.f32 %v1400_v6  ;;  %v5656_v6 = vpack.c.bf16 %v4643_v47, %v4642_v29 }
 0x3b1   :  { %v1406_v16 = vpop.xlane.xlu1 %1405 }
 0x3b2   :  { %4739 = vrcp.f32 %v1406_v16  ;;  %v1409_v39 = vpop.xlane.xlu0 %1408 }
 0x3b3   :  { %4741 = vrcp.f32 %v1409_v39 }
 0x3b5   :  { %v1292_v20 = vpop.xlane.xlu1 %1291 }
 0x3b6   :  { %v1330_v51 = vsub.f32 %v5495_v43, %v1292_v20  ;;  %v1295_v61 = vpop.xlane.xlu0 %1294 }
 0x3b7   :  { %v4736_v57 = vpop.eup %4735  ;;  %v1331_v21 = vsub.f32 %v5500_v33, %v1295_v61 }
 0x3b8   :  { %v4738_v24 = vpop.eup %4737  ;;  %v1390_v15 = vmul.f32 1.442695, %v1330_v51  ;;  %v1527_v2 = vmul.f32 %v4736_v57, %v5482_v14 }
 0x3b9   :  { %v1392_v42 = vmul.f32 1.442695, %v1331_v21  ;;  %v1298_v13 = vpop.xlane.xlu1 %1297  ;;  %v1526_v17 = vmul.f32 %v4738_v24, %v5484_v36 }
 0x3ba   :  { %4743 = vpow2.f32 %v1390_v15  ;;  %v1332_v56 = vsub.f32 %v5505_v50, %v1298_v13  ;;  %v1301_v43 = vpop.xlane.xlu0 %1300 }
 0x3bb   :  { %4745 = vpow2.f32 %v1392_v42  ;;  %v1333_v23 = vsub.f32 %v5510_v48, %v1301_v43  ;;  %4125 = vmatprep.mubr.msk.f32.mxu0 %vm1205_vm3, %v1526_v17  ;;  %v4638_v17 = vunpack.i.h.bf16 %v5472_v44 }
 0x3bc   :  { %v4740_v33 = vpop.eup %4739  ;;  %4126 = vmatmul.mubr.msk.f32.vlgmr.msra.gmra.mrb[24].mxu0 %vm1205_vm3, %v1527_v2  ;;  %v1394_v46 = vmul.f32 1.442695, %v1332_v56 }
 0x3bd   :  { %v4742_v36 = vpop.eup %4741  ;;  %v1396_v14 = vmul.f32 1.442695, %v1333_v23  ;;  %4424 = vmatpush3.bf16.msra.mxu0 %v5306_v28  ;;  %v1528_v50 = vmul.f32 %v4740_v33, %v5490_v35  ;;  %v4646_v61 = vpop.permute.xlu1 %4645 }
 0x3be   :  { %4426 = vmatprep.subr.bf16.mxu0 %v4425_v5  ;;  %v1529_v48 = vmul.f32 %v4742_v36, %v5492_v63  ;;  %v4648_v29 = vunpack.i.h.bf16 %v4646_v61  ;;  %v4647_v36 = vunpack.i.l.bf16 %v4646_v61 }
 0x3bf   :  { %4747 = vpow2.f32 %v1396_v14  ;;  %4128 = vmatprep.mubr.msk.f32.mxu0 %vm1205_vm3, %v1528_v50 }
 0x3c0   :  { %4129 = vmatmul.mubr.msk.f32.gmra.mrb[26].mxu0 %vm1205_vm3, %v1529_v48  ;;  %4749 = vpow2.f32 %v1394_v46  ;;  %v4445_v48 = vpack.c.bf16 %v4648_v29, %v4647_v36 }
 0x3c1   :  { %4428 = vmatpush3.bf16.msra.mxu0 %v4425_v5 }
 0x3c2   :  { %4438 = vmatprep.subr.bf16.mxu0 %v5656_v6 }
 0x3c4   :  { %v5660_v59 = vpop.eup %4743 }
 0x3c5   :  { %v5662_v16 = vpop.eup %4745  ;;  %v1482_v28 = vsel %vm1205_vm3, %v5660_v59, 0.0 }
 0x3c6   :  { %1483 = vadd.xlane.f32.xlu0 %v1482_v28  ;;  %v1485_v35 = vsel %vm1205_vm3, %v5662_v16, 0.0 }
 0x3c7   :  { %1486 = vadd.xlane.f32.xlu1 %v1485_v35 }
 0x3c9   :  { %v5668_v63 = vpop.eup %4747 }
 0x3ca   :  { %v1491_v39 = vsel %vm1205_vm3, %v5668_v63, 0.0  ;;  %v5672_v20 = vpop.eup %4749 }
 0x3cb   :  { %1492 = vadd.xlane.f32.xlu0 %v1491_v39  ;;  %v1488_v51 = vsel %vm1205_vm3, %v5672_v20, 0.0 }
 0x3cf   :  { %1489 = vadd.xlane.f32.xlu0 %v1488_v51 }
 0x3d8   :  { %4655 = vrot.lane.b32.xlu1 %v5013_v54, %s4872_s19 }
 0x3dc   :  { %4660 = vrot.lane.b32.xlu1 %v4999_v45, %s4873_s20 }
 0x3e0   :  { %4665 = vrot.lane.b32.xlu1 %v4999_v45, %s4874_s21 }
 0x3e4   :  { %4670 = vrot.lane.b32.xlu1 %v5013_v54, %s4873_s20 }
 0x3e5   :  { %4650 = vrot.lane.b32.xlu0 %v5013_v54, %s4871_s18 }
 0x3e8   :  { %4675 = vrot.lane.b32.xlu1 %v5013_v54, %s4874_s21  ;;  %v4637_v54 = vunpack.i.l.bf16 %v5472_v44 }
 0x3ea   :  { %v4433_v47 = vpack.c.bf16 %v4638_v17, %v4637_v54 }
 0x3ed   :  { %v1415_v57 = vpop.xlane.xlu0 %1414 }
 0x3ee   :  { %4751 = vrcp.f32 %v1415_v57 }
 0x3f8   :  { %v4752_v42 = vpop.eup %4751 }
 0x3f9   :  { %v1427_v21 = vpop.xlane.xlu0 %1426  ;;  %v1531_v23 = vmul.f32 %v4752_v42, %v5522_v60 }
 0x3fd   :  { %v1412_v24 = vpop.xlane.xlu1 %1411 }
 0x3fe   :  { %4753 = vrcp.f32 %v1412_v24 }
 0x3ff   :  { %4755 = vrcp.f32 %v1427_v21 }
 0x401   :  { %v1424_v11 = vpop.xlane.xlu1 %1423  ;;  %v1421_v52 = vpop.xlane.xlu0 %1420 }
 0x402   :  { %4757 = vrcp.f32 %v1424_v11 }
 0x403   :  { %4759 = vrcp.f32 %v1421_v52 }
 0x405   :  { %v1418_v45 = vpop.xlane.xlu1 %1417  ;;  %v1433_v15 = vpop.xlane.xlu0 %1432 }
 0x406   :  { %4761 = vrcp.f32 %v1418_v45 }
 0x407   :  { %4763 = vrcp.f32 %v1433_v15 }
 0x408   :  { %v4754_v13 = vpop.eup %4753 }
 0x409   :  { %v1430_v2 = vpop.xlane.xlu1 %1429  ;;  %v1439_v56 = vpop.xlane.xlu0 %1438  ;;  %v1530_v43 = vmul.f32 %v4754_v13, %v5538_v3 }
 0x40a   :  { %4765 = vrcp.f32 %v1430_v2  ;;  %v4756_v33 = vpop.eup %4755 }
 0x40b   :  { %4139 = vmatprep.mubr.msk.f32.mxu1 %vm1205_vm3, %v1530_v43  ;;  %4767 = vrcp.f32 %v1439_v56  ;;  %v1535_v60 = vmul.f32 %v4756_v33, %v5532_v41 }
 0x40c   :  { %v4758_v5 = vpop.eup %4757  ;;  %4140 = vmatmul.mubr.msk.f32.vlgmr.msra.gmra.mrb[16].mxu1 %vm1205_vm3, %v1531_v23 }
 0x40d   :  { %4432 = vmatpush3.bf16.msra.mxu1 %v5299_v27  ;;  %v1436_v44 = vpop.xlane.xlu1 %1435  ;;  %v5695_v46 = vpop.xlane.xlu0 %1450  ;;  %v1534_v3 = vmul.f32 %v4758_v5, %v5543_v4 }
 0x40e   :  { %4769 = vrcp.f32 %v1436_v44  ;;  %4434 = vmatprep.subr.bf16.mxu1 %v4433_v47  ;;  %v4760_v14 = vpop.eup %4759 }
 0x40f   :  { %4153 = vmatprep.mubr.msk.f32.mxu0 %vm1205_vm3, %v1534_v3  ;;  %v1533_v41 = vmul.f32 %v4760_v14, %v5546_v22 }
 0x410   :  { %v4762_v50 = vpop.eup %4761  ;;  %4154 = vmatmul.mubr.msk.f32.vlgmr.msra.gmra.mrb[28].mxu0 %vm1205_vm3, %v1535_v60 }
 0x411   :  { %4436 = vmatpush3.bf16.msra.mxu1 %v4433_v47  ;;  %4440 = vmatpush3.bf16.msra.mxu0 %v5656_v6  ;;  %v1448_v27 = vpop.xlane.xlu1 %1447  ;;  %v1532_v28 = vmul.f32 %v4762_v50, %v5553_v49  ;;  %v1445_v4 = vpop.xlane.xlu0 %1444 }
 0x412   :  { %4771 = vrcp.f32 %v1448_v27  ;;  %4446 = vmatprep.subr.bf16.mxu1 %v4445_v48  ;;  %v4764_v35 = vpop.eup %4763 }
 0x413   :  { %4142 = vmatprep.mubr.msk.f32.mxu1 %vm1205_vm3, %v1532_v28  ;;  %4773 = vrcp.f32 %v1445_v4  ;;  %v1537_v6 = vmul.f32 %v4764_v35, %v5556_v53 }
 0x414   :  { %v4766_v39 = vpop.eup %4765  ;;  %4143 = vmatmul.mubr.msk.f32.gmra.mrb[18].mxu1 %vm1205_vm3, %v1533_v41 }
 0x415   :  { %v1442_v51 = vpop.xlane.xlu1 %1441  ;;  %v1536_v61 = vmul.f32 %v4766_v39, %v5563_v10  ;;  %v4768_v57 = vpop.eup %4767 }
 0x416   :  { %4775 = vrcp.f32 %v1442_v51  ;;  %v1539_v21 = vmul.f32 %v4768_v57, %v5566_v26  ;;  %v1457_v26 = vpop.xlane.xlu0 %1456 }
 0x417   :  { %4156 = vmatprep.mubr.msk.f32.mxu0 %vm1205_vm3, %v1536_v61 }
 0x418   :  { %v4770_v49 = vpop.eup %4769  ;;  %4157 = vmatmul.mubr.msk.f32.gmra.mrb[30].mxu0 %vm1205_vm3, %v1537_v6 }
 0x419   :  { %v1538_v22 = vmul.f32 %v4770_v49, %v5572_v9 }
 0x41b   :  { %4167 = vmatprep.mubr.msk.f32.mxu1 %vm1205_vm3, %v1538_v22 }
 0x41c   :  { %v4772_v24 = vpop.eup %4771  ;;  %4168 = vmatmul.mubr.msk.f32.vlgmr.msra.gmra.mrb[20].mxu1 %vm1205_vm3, %v1539_v21 }
 0x41d   :  { %4448 = vmatpush3.bf16.msra.mxu1 %v4445_v48  ;;  %v1475_v10 = vpop.xlane.xlu1 %1474  ;;  %v1542_v11 = vmul.f32 %v4772_v24, %v5583_v58  ;;  %v4774_v53 = vpop.eup %4773 }
 0x41e   :  { %v1541_v9 = vmul.f32 %v4774_v53, %v5586_v37  ;;  %v1454_v58 = vpop.xlane.xlu0 %1453 }
 0x41f   :  { %4181 = vmatprep.mubr.msk.f32.mxu0 %vm1205_vm3, %v1542_v11 }
 0x420   :  { %v4776_v52 = vpop.eup %4775 }
 0x421   :  { %v1460_v45 = vpop.xlane.xlu1 %1459  ;;  %v1540_v15 = vmul.f32 %v4776_v52, %v5592_v32 }
 0x422   :  { %4777 = vrcp.f32 %v1460_v45  ;;  %v1463_v17 = vpop.xlane.xlu0 %1462 }
 0x423   :  { %4170 = vmatprep.mubr.msk.f32.mxu1 %vm1205_vm3, %v1540_v15  ;;  %4779 = vrcp.f32 %v1463_v17 }
 0x424   :  { %4171 = vmatmul.mubr.msk.f32.gmra.mrb[22].mxu1 %vm1205_vm3, %v1541_v9 }
 0x425   :  { %v1478_v32 = vpop.xlane.xlu1 %1477 }
 0x426   :  { %v1472_v54 = vpop.xlane.xlu0 %1471 }
 0x42a   :  { %v1469_v2 = vpop.xlane.xlu0 %1468 }
 0x42c   :  { %v4778_v42 = vpop.eup %4777 }
 0x42d   :  { %v1546_v13 = vmul.f32 %v4778_v42, %v5612_v62  ;;  %v4780_v36 = vpop.eup %4779 }
 0x42e   :  { %v1481_v56 = vpop.xlane.xlu0 %1480  ;;  %v1547_v14 = vmul.f32 %v4780_v36, %v5608_v40  ;;  %v2339_v36 = vld [vmem:[%s6130_s3 + $0x28] sm:$0xff] }
 0x42f   :  { %4195 = vmatprep.mubr.msk.f32.mxu1 %vm1205_vm3, %v1546_v13 }
 0x432   :  { %v1466_v43 = vpop.xlane.xlu0 %1465 }
 0x433   :  { %4781 = vrcp.f32 %v1466_v43 }
 0x434   :  { %4783 = vrcp.f32 %v1469_v2  ;;  %v2335_v2 = vld [vmem:[%s6130_s3 + $0x8] sm:$0xff] }
 0x43d   :  { %v4782_v60 = vpop.eup %4781 }
 0x43e   :  { %v4784_v50 = vpop.eup %4783  ;;  %v1548_v28 = vmul.f32 %v4782_v60, %v5636_v18  ;;  %v2340_v60 = vld [vmem:[%s6130_s3 + $0x30] sm:$0xff] }
 0x43f   :  { %v1549_v57 = vmul.f32 %v4784_v50, %v5620_v55 }
 0x453   :  { %v1484_v37 = vpop.xlane.xlu0 %1483 }
 0x454   :  { %v1487_v23 = vpop.xlane.xlu1 %1486  ;;  %4785 = vrcp.f32 %v1484_v37 }
 0x455   :  { %4787 = vrcp.f32 %v5695_v46 }
 0x456   :  { %4789 = vrcp.f32 %v1454_v58 }
 0x457   :  { %4791 = vrcp.f32 %v1457_v26 }
 0x458   :  { %v4656_v33 = vpop.permute.xlu1 %4655  ;;  %v1493_v5 = vpop.xlane.xlu0 %1492  ;;  %4793 = vrcp.f32 %v1472_v54 }
 0x459   :  { %v4658_v47 = vunpack.i.h.bf16 %v4656_v33  ;;  %v4657_v29 = vunpack.i.l.bf16 %v4656_v33  ;;  %4795 = vrcp.f32 %v1475_v10  ;;  %v2336_v33 = vld [vmem:[%s6130_s3 + $0x10] sm:$0xff] }
 0x45a   :  { %4797 = vrcp.f32 %v1478_v32 }
 0x45b   :  { %v4449_v62 = vpack.c.bf16 %v4658_v47, %v4657_v29  ;;  %4799 = vrcp.f32 %v1487_v23 }
 0x45c   :  { %v4661_v44 = vpop.permute.xlu1 %4660  ;;  %v1490_v3 = vpop.xlane.xlu0 %1489 }
 0x45d   :  { %4450 = vmatprep.subr.bf16.mxu1 %v4449_v62  ;;  %v4663_v51 = vunpack.i.h.bf16 %v4661_v44  ;;  %v4662_v61 = vunpack.i.l.bf16 %v4661_v44  ;;  %4801 = vrcp.f32 %v1490_v3 }
 0x45e   :  { %4452 = vmatpush3.bf16.msra.mxu1 %v4449_v62  ;;  %v4786_v39 = vpop.eup %4785  ;;  %4803 = vrcp.f32 %v1481_v56 }
 0x45f   :  { %v4788_v49 = vpop.eup %4787  ;;  %v1554_v10 = vmul.f32 %v4786_v39, %v5660_v59  ;;  %v4453_v11 = vpack.c.bf16 %v4663_v51, %v4662_v61  ;;  %4805 = vrcp.f32 %v1493_v5 }
 0x460   :  { %v4666_v48 = vpop.permute.xlu1 %4665  ;;  %v4651_v27 = vpop.permute.xlu0 %4650  ;;  %v1543_v53 = vmul.f32 %v4788_v49, %v5576_v19 }
 0x461   :  { %v4668_v4 = vunpack.i.h.bf16 %v4666_v48  ;;  %v4667_v46 = vunpack.i.l.bf16 %v4666_v48  ;;  %v4653_v41 = vunpack.i.h.bf16 %v4651_v27  ;;  %v4652_v35 = vunpack.i.l.bf16 %v4651_v27  ;;  %4196 = vmatmul.mubr.msk.f32.vlgmr.msra.gmra.mrb[24].mxu1 %vm1205_vm3, %v1547_v14  ;;  %v4790_v22 = vpop.eup %4789  ;;  %v3785_v27 = vld [vmem:[%s6132_s5 + $0x4] ss:$0 sm:$0xff] }
 0x462   :  { %4198 = vmatprep.mubr.msk.f32.mxu1 %vm1205_vm3, %v1548_v28  ;;  %v4792_v55 = vpop.eup %4791  ;;  %v1544_v45 = vmul.f32 %v4790_v22, %v5602_v8  ;;  %v2334_v8 = vld [vmem:[%s6130_s3] sm:$0xff]  ;;  %3183 = vrot.lane.b32.xlu0 %v3785_v27, %s4875_s22 }
 0x463   :  { %v4461_v40 = vpack.c.bf16 %v4668_v4, %v4667_v46  ;;  %v4441_v6 = vpack.c.bf16 %v4653_v41, %v4652_v35  ;;  %v4794_v15 = vpop.eup %4793  ;;  %v1545_v13 = vmul.f32 %v4792_v55, %v5596_v38  ;;  %v2341_v41 = vld [vmem:[%s6130_s3 + $0x38] sm:$0xff] }
 0x464   :  { %v4671_v18 = vpop.permute.xlu1 %4670  ;;  %v4796_v59 = vpop.eup %4795  ;;  %v1550_v17 = vmul.f32 %v4794_v15, %v5618_v0 }
 0x465   :  { %v4673_v21 = vunpack.i.h.bf16 %v4671_v18  ;;  %v4672_v24 = vunpack.i.l.bf16 %v4671_v18  ;;  %4442 = vmatprep.subr.bf16.mxu0 %v4441_v6  ;;  %4199 = vmatmul.mubr.msk.f32.gmra.mrb[26].mxu1 %vm1205_vm3, %v1549_v57  ;;  %v4798_v58 = vpop.eup %4797  ;;  %v1551_v38 = vmul.f32 %v4796_v59, %v5610_v1  ;;  %v2337_v1 = vld [vmem:[%s6130_s3 + $0x18] sm:$0xff] }
 0x466   :  { %4462 = vmatprep.subr.bf16.mxu1 %v4461_v40  ;;  %4444 = vmatpush3.bf16.msra.mxu0 %v4441_v6  ;;  %v4800_v54 = vpop.eup %4799  ;;  %v1552_v32 = vmul.f32 %v4798_v58, %v5626_v25 }
 0x467   :  { %4464 = vmatpush3.bf16.msra.mxu1 %v4461_v40  ;;  %4223 = vmatprep.mubr.msk.f32.mxu1 %vm1205_vm3, %v1554_v10  ;;  %v4457_v9 = vpack.c.bf16 %v4673_v21, %v4672_v24  ;;  %v4802_v56 = vpop.eup %4801  ;;  %v1555_v43 = vmul.f32 %v4800_v54, %v5662_v16 }
 0x468   :  { %4454 = vmatprep.subr.bf16.mxu0 %v4453_v11  ;;  %v4676_v52 = vpop.permute.xlu1 %4675  ;;  %v4804_v0 = vpop.eup %4803  ;;  %v1556_v23 = vmul.f32 %v4802_v56, %v5672_v20 }
 0x469   :  { %v4678_v26 = vunpack.i.h.bf16 %v4676_v52  ;;  %v4677_v42 = vunpack.i.l.bf16 %v4676_v52  ;;  %4182 = vmatmul.mubr.msk.f32.vlgmr.msra.gmra.mrb[32].mxu0 %vm1205_vm3, %v1543_v53  ;;  %v4806_v37 = vpop.eup %4805  ;;  %v1553_v25 = vmul.f32 %v4804_v0, %v5632_v12  ;;  %v2338_v12 = vld [vmem:[%s6130_s3 + $0x20] sm:$0xff] }
 0x46a   :  { %4184 = vmatprep.mubr.msk.f32.mxu0 %vm1205_vm3, %v1544_v45  ;;  %4456 = vmatpush3.bf16.msra.mxu0 %v4453_v11  ;;  %v1557_v16 = vmul.f32 %v4806_v37, %v5668_v63 }
 0x46b   :  { %v4465_v19 = vpack.c.bf16 %v4678_v26, %v4677_v42  ;;  %4458 = vmatprep.subr.bf16.mxu0 %v4457_v9 }
 0x46d   :  { %4185 = vmatmul.mubr.msk.f32.gmra.mrb[34].mxu0 %vm1205_vm3, %v1545_v13  ;;  %4466 = vmatprep.subr.bf16.mxu1 %v4465_v19 }
 0x46e   :  { %4460 = vmatpush3.bf16.msra.mxu0 %v4457_v9  ;;  %4209 = vmatprep.mubr.msk.f32.mxu0 %vm1205_vm3, %v1550_v17 }
 0x46f   :  { %4468 = vmatpush3.bf16.msra.mxu1 %v4465_v19  ;;  %4229 = vmatprep.subr.mxu0 %v2334_v8 }
 0x470   :  { %4237 = vmatprep.subr.mxu1 %v2335_v2 }
 0x471   :  { %4210 = vmatmul.mubr.msk.f32.vlgmr.msra.gmra.mrb[36].mxu0 %vm1205_vm3, %v1551_v38 }
 0x472   :  { %4224 = vmatmul.mubr.msk.f32.vlgmr.msra.gmra.mrb[28].mxu1 %vm1205_vm3, %v1555_v43  ;;  %4212 = vmatprep.mubr.msk.f32.mxu0 %vm1205_vm3, %v1552_v32 }
 0x473   :  { %4226 = vmatprep.mubr.msk.f32.mxu1 %vm1205_vm3, %v1556_v23  ;;  %4230 = vmatpush3.msra.mxu0 %v2334_v8 }
 0x474   :  { %4238 = vmatpush3.msra.mxu1 %v2335_v2  ;;  %4245 = vmatprep.subr.mxu0 %v2336_v33 }
 0x475   :  { %4213 = vmatmul.mubr.msk.f32.gmra.mrb[38].mxu0 %vm1205_vm3, %v1553_v25  ;;  %4253 = vmatprep.subr.mxu1 %v2337_v1 }
 0x476   :  { %4227 = vmatmul.mubr.msk.f32.gmra.mrb[30].mxu1 %vm1205_vm3, %v1557_v16 }
 0x48f   :  { %v4127_v20 = vpop.f32.mrb[24].mxu0 }
 0x490   :  { %v1636_v5 = vpop.f32.mrb[25].mxu0 }
 0x491   :  { %4231 = vmatprep.mubr.msk.f32.mxu0 %vm340_vm1, %v1636_v5 }
 0x492   :  { %4232 = vmatmul.mubr.msk.f32.vlgmr.msra.gmra.mrb[40].mxu0 %vm340_vm1, %v4127_v20 }
 0x493   :  { %v4130_v47 = vpop.f32.mrb[26].mxu0  ;;  %4246 = vmatpush3.msra.mxu0 %v2336_v33 }
 0x494   :  { %v1646_v29 = vpop.f32.mrb[27].mxu0  ;;  %4261 = vmatprep.subr.mxu0 %v2338_v12 }
 0x495   :  { %4234 = vmatprep.mubr.msk.f32.mxu0 %vm340_vm1, %v1646_v29 }
 0x496   :  { %4235 = vmatmul.mubr.msk.f32.gmra.mrb[42].mxu0 %vm340_vm1, %v4130_v47 }
 0x4df   :  { %v4141_v63 = vpop.f32.mrb[16].mxu1 }
 0x4e0   :  { %v1733_v62 = vpop.f32.mrb[17].mxu1 }
 0x4e1   :  { %4239 = vmatprep.mubr.msk.f32.mxu1 %vm340_vm1, %v1733_v62 }
 0x4e2   :  { %4240 = vmatmul.mubr.msk.f32.vlgmr.msra.gmra.mrb[32].mxu1 %vm340_vm1, %v4141_v63 }
 0x4e3   :  { %v4155_v44 = vpop.f32.mrb[28].mxu0  ;;  %4254 = vmatpush3.msra.mxu1 %v2337_v1 }
 0x4e4   :  { %v1830_v3 = vpop.f32.mrb[29].mxu0  ;;  %4269 = vmatprep.subr.mxu1 %v2339_v36 }
 0x4e5   :  { %4247 = vmatprep.mubr.msk.f32.mxu0 %vm340_vm1, %v1830_v3 }
 0x4e6   :  { %4248 = vmatmul.mubr.msk.f32.vlgmr.msra.gmra.mrb[44].mxu0 %vm340_vm1, %v4155_v44 }
 0x4e7   :  { %v4144_v14 = vpop.f32.mrb[18].mxu1  ;;  %4262 = vmatpush3.msra.mxu0 %v2338_v12 }
 0x4e8   :  { %v1743_v50 = vpop.f32.mrb[19].mxu1  ;;  %4277 = vmatprep.subr.mxu0 %v2340_v60 }
 0x4e9   :  { %4242 = vmatprep.mubr.msk.f32.mxu1 %vm340_vm1, %v1743_v50 }
 0x4ea   :  { %4243 = vmatmul.mubr.msk.f32.gmra.mrb[34].mxu1 %vm340_vm1, %v4144_v14 }
 0x4eb   :  { %v4158_v48 = vpop.f32.mrb[30].mxu0 }
 0x4ec   :  { %v1840_v28 = vpop.f32.mrb[31].mxu0 }
 0x4ed   :  { %4250 = vmatprep.mubr.msk.f32.mxu0 %vm340_vm1, %v1840_v28 }
 0x4ee   :  { %4251 = vmatmul.mubr.msk.f32.gmra.mrb[46].mxu0 %vm340_vm1, %v4158_v48 }
 0x4ef   :  { %v4169_v4 = vpop.f32.mrb[20].mxu1 }
 0x4f0   :  { %v1927_v46 = vpop.f32.mrb[21].mxu1 }
 0x4f1   :  { %4255 = vmatprep.mubr.msk.f32.mxu1 %vm340_vm1, %v1927_v46 }
 0x4f2   :  { %4256 = vmatmul.mubr.msk.f32.vlgmr.msra.gmra.mrb[36].mxu1 %vm340_vm1, %v4169_v4 }
 0x4f3   :  { %4270 = vmatpush3.msra.mxu1 %v2339_v36 }
 0x4f4   :  { %4285 = vmatprep.subr.mxu1 %v2341_v41 }
 0x4f7   :  { %v4172_v35 = vpop.f32.mrb[22].mxu1 }
 0x4f8   :  { %v1937_v39 = vpop.f32.mrb[23].mxu1 }
 0x4f9   :  { %4258 = vmatprep.mubr.msk.f32.mxu1 %vm340_vm1, %v1937_v39 }
 0x4fa   :  { %4259 = vmatmul.mubr.msk.f32.gmra.mrb[38].mxu1 %vm340_vm1, %v4172_v35 }
 0x534   :  { %v4197_v51 = vpop.f32.mrb[24].mxu1 }
 0x535   :  { %v2121_v61 = vpop.f32.mrb[25].mxu1 }
 0x536   :  { %4271 = vmatprep.mubr.msk.f32.mxu1 %vm340_vm1, %v2121_v61 }
 0x537   :  { %4272 = vmatmul.mubr.msk.f32.vlgmr.msra.gmra.mrb[40].mxu1 %vm340_vm1, %v4197_v51 }
 0x538   :  { %v4200_v40 = vpop.f32.mrb[26].mxu1  ;;  %4286 = vmatpush3.msra.mxu1 %v2341_v41 }
 0x539   :  { %v2131_v6 = vpop.f32.mrb[27].mxu1 }
 0x53a   :  { %4274 = vmatprep.mubr.msk.f32.mxu1 %vm340_vm1, %v2131_v6 }
 0x53b   :  { %4275 = vmatmul.mubr.msk.f32.gmra.mrb[42].mxu1 %vm340_vm1, %v4200_v40 }
 0x53c   :  { %v4183_v57 = vpop.f32.mrb[32].mxu0 }
 0x53d   :  { %v2024_v49 = vpop.f32.mrb[33].mxu0 }
 0x53e   :  { %4263 = vmatprep.mubr.msk.f32.mxu0 %vm340_vm1, %v2024_v49 }
 0x53f   :  { %4264 = vmatmul.mubr.msk.f32.vlgmr.msra.gmra.mrb[48].mxu0 %vm340_vm1, %v4183_v57 }
 0x540   :  { %v4186_v18 = vpop.f32.mrb[34].mxu0  ;;  %4278 = vmatpush3.msra.mxu0 %v2340_v60 }
 0x541   :  { %v2034_v22 = vpop.f32.mrb[35].mxu0 }
 0x542   :  { %4266 = vmatprep.mubr.msk.f32.mxu0 %vm340_vm1, %v2034_v22 }
 0x543   :  { %4267 = vmatmul.mubr.msk.f32.gmra.mrb[50].mxu0 %vm340_vm1, %v4186_v18 }
 0x544   :  { %v4211_v21 = vpop.f32.mrb[36].mxu0 }
 0x545   :  { %v4225_v24 = vpop.f32.mrb[28].mxu1  ;;  %v2218_v10 = vpop.f32.mrb[37].mxu0 }
 0x546   :  { %v2315_v11 = vpop.f32.mrb[29].mxu1  ;;  %4279 = vmatprep.mubr.msk.f32.mxu0 %vm340_vm1, %v2218_v10 }
 0x547   :  { %4287 = vmatprep.mubr.msk.f32.mxu1 %vm340_vm1, %v2315_v11  ;;  %4280 = vmatmul.mubr.msk.f32.vlgmr.msra.gmra.mrb[52].mxu0 %vm340_vm1, %v4211_v21 }
 0x548   :  { %4288 = vmatmul.mubr.msk.f32.vlgmr.msra.gmra.mrb[44].mxu1 %vm340_vm1, %v4225_v24  ;;  %v4214_v53 = vpop.f32.mrb[38].mxu0 }
 0x549   :  { %v4228_v55 = vpop.f32.mrb[30].mxu1  ;;  %v2228_v52 = vpop.f32.mrb[39].mxu0 }
 0x54a   :  { %v2325_v45 = vpop.f32.mrb[31].mxu1  ;;  %4282 = vmatprep.mubr.msk.f32.mxu0 %vm340_vm1, %v2228_v52 }
 0x54b   :  { %4290 = vmatprep.mubr.msk.f32.mxu1 %vm340_vm1, %v2325_v45  ;;  %4283 = vmatmul.mubr.msk.f32.gmra.mrb[54].mxu0 %vm340_vm1, %v4214_v53 }
 0x54c   :  { %4291 = vmatmul.mubr.msk.f32.gmra.mrb[46].mxu1 %vm340_vm1, %v4228_v55  ;;  %3378 = vmatprep.mubr.f32.mxu0 %v4867_v7 }
 0x565   :  { %v4233_v15 = vpop.f32.mrb[40].mxu0 }
 0x566   :  { %v2420_v9 = vpop.f32.mrb[41].mxu0  ;;  %v3133_v19 = vsel %vm82_vm0, %v4233_v15, 0.0 }
 0x567   :  { %v3118_v17 = vsel %vm82_vm0, %v2420_v9, 0.0 }
 0x569   :  { %v4236_v26 = vpop.f32.mrb[42].mxu0 }
 0x56a   :  { %v2430_v42 = vpop.f32.mrb[43].mxu0  ;;  %v3163_v33 = vsel %vm82_vm0, %v4236_v26, 0.0 }
 0x56b   :  { %v3148_v16 = vsel %vm82_vm0, %v2430_v42, 0.0 }
 0x5b5   :  { %v4241_v59 = vpop.f32.mrb[32].mxu1 }
 0x5b6   :  { %v3134_v13 = vsel %vm82_vm0, %v4241_v59, 0.0  ;;  %v2517_v58 = vpop.f32.mrb[33].mxu1 }
 0x5b7   :  { %v3135_v8 = vadd.f32 %v3134_v13, %v3133_v19  ;;  %v3119_v54 = vsel %vm82_vm0, %v2517_v58, 0.0 }
 0x5b8   :  { %v3120_v2 = vadd.f32 %v3119_v54, %v3118_v17 }
 0x5b9   :  { %v4249_v56 = vpop.f32.mrb[44].mxu0 }
 0x5ba   :  { %v3136_v38 = vsel %vm82_vm0, %v4249_v56, 0.0  ;;  %v2614_v0 = vpop.f32.mrb[45].mxu0 }
 0x5bb   :  { %v3137_v43 = vadd.f32 %v3136_v38, %v3135_v8  ;;  %v3121_v32 = vsel %vm82_vm0, %v2614_v0, 0.0 }
 0x5bc   :  { %v3122_v37 = vadd.f32 %v3121_v32, %v3120_v2 }
 0x5bd   :  { %v4244_v23 = vpop.f32.mrb[34].mxu1 }
 0x5be   :  { %v3164_v1 = vsel %vm82_vm0, %v4244_v23, 0.0  ;;  %v2527_v25 = vpop.f32.mrb[35].mxu1 }
 0x5bf   :  { %v3165_v20 = vadd.f32 %v3164_v1, %v3163_v33  ;;  %v3149_v5 = vsel %vm82_vm0, %v2527_v25, 0.0 }
 0x5c0   :  { %v3150_v47 = vadd.f32 %v3149_v5, %v3148_v16 }
 0x5c1   :  { %v4252_v29 = vpop.f32.mrb[46].mxu0 }
 0x5c2   :  { %v3166_v12 = vsel %vm82_vm0, %v4252_v29, 0.0  ;;  %v2624_v63 = vpop.f32.mrb[47].mxu0 }
 0x5c3   :  { %v3167_v62 = vadd.f32 %v3166_v12, %v3165_v20  ;;  %v3151_v36 = vsel %vm82_vm0, %v2624_v63, 0.0 }
 0x5c4   :  { %v3152_v44 = vadd.f32 %v3151_v36, %v3150_v47 }
 0x5c5   :  { %v4257_v3 = vpop.f32.mrb[36].mxu1 }
 0x5c6   :  { %v3138_v60 = vsel %vm82_vm0, %v4257_v3, 0.0  ;;  %v2711_v14 = vpop.f32.mrb[37].mxu1 }
 0x5c7   :  { %v3139_v50 = vadd.f32 %v3138_v60, %v3137_v43  ;;  %v3123_v48 = vsel %vm82_vm0, %v2711_v14, 0.0  ;;  %v4839_v14 = vld [vmem:[%s6127_s0 + $0x8] sm:$0xff] }
 0x5c8   :  { %v3124_v27 = vadd.f32 %v3123_v48, %v3122_v37  ;;  %v3184_v37 = vpop.permute.xlu0 %3183 }
 0x5cd   :  { %v4260_v28 = vpop.f32.mrb[38].mxu1 }
 0x5ce   :  { %v3168_v4 = vsel %vm82_vm0, %v4260_v28, 0.0  ;;  %v2721_v46 = vpop.f32.mrb[39].mxu1 }
 0x5cf   :  { %v3169_v41 = vadd.f32 %v3168_v4, %v3167_v62  ;;  %v3153_v35 = vsel %vm82_vm0, %v2721_v46, 0.0 }
 0x5d0   :  { %v3154_v39 = vadd.f32 %v3153_v35, %v3152_v44 }
 0x60a   :  { %v4273_v51 = vpop.f32.mrb[40].mxu1 }
 0x60b   :  { %v2905_v61 = vpop.f32.mrb[41].mxu1  ;;  %v3142_v24 = vsel %vm82_vm0, %v4273_v51, 0.0 }
 0x60c   :  { %v3127_v11 = vsel %vm82_vm0, %v2905_v61, 0.0  ;;  %v4842_v61 = vld [vmem:[%s6127_s0 + $0x10] sm:$0xff] }
 0x60e   :  { %v4276_v40 = vpop.f32.mrb[42].mxu1 }
 0x60f   :  { %v2915_v6 = vpop.f32.mrb[43].mxu1  ;;  %v3172_v42 = vsel %vm82_vm0, %v4276_v40, 0.0 }
 0x610   :  { %v3157_v19 = vsel %vm82_vm0, %v2915_v6, 0.0 }
 0x612   :  { %v4265_v57 = vpop.f32.mrb[48].mxu0 }
 0x613   :  { %v3140_v49 = vsel %vm82_vm0, %v4265_v57, 0.0  ;;  %v2808_v18 = vpop.f32.mrb[49].mxu0 }
 0x614   :  { %v3141_v22 = vadd.f32 %v3140_v49, %v3139_v50  ;;  %v3125_v21 = vsel %vm82_vm0, %v2808_v18, 0.0 }
 0x615   :  { %v3126_v10 = vadd.f32 %v3125_v21, %v3124_v27  ;;  %v4840_v27 = vld [vmem:[%s6127_s0] sm:$0xff] }
 0x616   :  { %v4268_v53 = vpop.f32.mrb[50].mxu0  ;;  %v3143_v55 = vadd.f32 %v3142_v24, %v3141_v22 }
 0x617   :  { %v3170_v52 = vsel %vm82_vm0, %v4268_v53, 0.0  ;;  %v2818_v45 = vpop.f32.mrb[51].mxu0  ;;  %v3128_v15 = vadd.f32 %v3127_v11, %v3126_v10 }
 0x618   :  { %v3171_v9 = vadd.f32 %v3170_v52, %v3169_v41  ;;  %v3155_v26 = vsel %vm82_vm0, %v2818_v45, 0.0 }
 0x619   :  { %v3156_v59 = vadd.f32 %v3155_v26, %v3154_v39  ;;  %v4841_v39 = vld [vmem:[%s6127_s0 + $0x18] sm:$0xff] }
 0x61a   :  { %v4281_v13 = vpop.f32.mrb[52].mxu0  ;;  %v3173_v58 = vadd.f32 %v3172_v42, %v3171_v9 }
 0x61b   :  { %v3144_v17 = vsel %vm82_vm0, %v4281_v13, 0.0  ;;  %v4289_v8 = vpop.f32.mrb[44].mxu1  ;;  %v3002_v54 = vpop.f32.mrb[53].mxu0  ;;  %v3158_v2 = vadd.f32 %v3157_v19, %v3156_v59 }
 0x61c   :  { %v3145_v56 = vadd.f32 %v3144_v17, %v3143_v55  ;;  %v3129_v38 = vsel %vm82_vm0, %v3002_v54, 0.0  ;;  %v3099_v0 = vpop.f32.mrb[45].mxu1  ;;  %v3146_v43 = vsel %vm82_vm0, %v4289_v8, 0.0  ;;  %v5883_v8 = vld [vmem:[%s6132_s5 + $0x3] ss:$0 sm:$0xff]  ;;  %v33_v54 = vld [vmem:[%s6129_s2 + $0x8] sm:$0xff] }
 0x61d   :  { %v3130_v32 = vadd.f32 %v3129_v38, %v3128_v15  ;;  %v3131_v33 = vsel %vm82_vm0, %v3099_v0, 0.0  ;;  %v32_v38 = vld [vmem:[%s6129_s2] sm:$0xff] }
 0x61e   :  { %v3147_v23 = vadd.f32 %v3146_v43, %v3145_v56  ;;  %v4284_v1 = vpop.f32.mrb[54].mxu0  ;;  %v34_v0 = vld [vmem:[%s6129_s2 + $0x20] sm:$0xff] }
 0x61f   :  { %v3132_v25 = vadd.f32 %v3131_v33, %v3130_v32  ;;  %v3174_v16 = vsel %vm82_vm0, %v4284_v1, 0.0  ;;  %v4292_v20 = vpop.f32.mrb[46].mxu1  ;;  %v3012_v5 = vpop.f32.mrb[55].mxu0  ;;  %v4471_v43 = vpack.c.bf16 %v34_v0, %v32_v38  ;;  %v37_v32 = vld [vmem:[%s6129_s2 + $0x48] sm:$0xff]  ;;  %v38_v1 = vld [vmem:[%s6129_s2 + $0x60] sm:$0xff]  ;;  %v3422_v38 = vld [vmem:[%s6131_s4 + $0x58] sm:$0xff] }
 0x620   :  { %v3175_v47 = vadd.f32 %v3174_v16, %v3173_v58  ;;  %v3109_v29 = vpop.f32.mrb[47].mxu1  ;;  %v3159_v12 = vsel %vm82_vm0, %v3012_v5, 0.0  ;;  %v3187_v63 = vadd.f32 %v3184_v37, %v3147_v23  ;;  %v3176_v62 = vsel %vm82_vm0, %v4292_v20, 0.0  ;;  %v36_v23 = vld [vmem:[%s6129_s2 + $0x40] sm:$0xff]  ;;  %v43_v16 = vld [vmem:[%s6129_s2 + $0xa8] sm:$0xff] }
 0x621   :  { %v3160_v36 = vadd.f32 %v3159_v12, %v3158_v2  ;;  %v3186_v44 = vadd.f32 %v3184_v37, %v3132_v25  ;;  %v3161_v60 = vsel %vm82_vm0, %v3109_v29, 0.0  ;;  %v35_v2 = vld [vmem:[%s6129_s2 + $0x28] sm:$0xff]  ;;  %v4475_v20 = vpack.c.bf16 %v38_v1, %v36_v23  ;;  %v42_v29 = vld [vmem:[%s6129_s2 + $0xa0] sm:$0xff] }
 0x622   :  { %v3177_v3 = vadd.f32 %v3176_v62, %v3175_v47  ;;  %v3191_v50 = vadd.f32 %v4839_v14, %v3187_v63  ;;  %v4469_v56 = vpack.c.bf16 %v35_v2, %v33_v54  ;;  %v41_v25 = vld [vmem:[%s6129_s2 + $0x88] sm:$0xff]  ;;  %v40_v47 = vld [vmem:[%s6129_s2 + $0x80] sm:$0xff] }
 0x623   :  { %v3162_v48 = vadd.f32 %v3161_v60, %v3160_v36  ;;  %v3190_v28 = vadd.f32 %v4840_v27, %v3186_v44  ;;  %v4477_v5 = vpack.c.bf16 %v43_v16, %v41_v25  ;;  %v45_v12 = vld [vmem:[%s6129_s2 + $0xc8] sm:$0xff]  ;;  %v4479_v62 = vpack.c.bf16 %v42_v29, %v40_v47  ;;  %v44_v44 = vld [vmem:[%s6129_s2 + $0xc0] sm:$0xff] }
 0x624   :  { %v3197_v4 = vsel %vm82_vm0, %v3191_v50, 0.0  ;;  %v3189_v46 = vadd.f32 %v3184_v37, %v3177_v3  ;;  %4470 = vmatprep.subr.bf16.mxu0 %v4469_v56  ;;  %v47_v63 = vld [vmem:[%s6129_s2 + $0xe8] sm:$0xff]  ;;  %v46_v3 = vld [vmem:[%s6129_s2 + $0xe0] sm:$0xff]  ;;  %v3421_v56 = vld [vmem:[%s6131_s4 + $0x50] sm:$0xff] }
 0x625   :  { %v3188_v41 = vadd.f32 %v3184_v37, %v3162_v48  ;;  %3198 = vadd.xlane.f32.xlu0 %v3197_v4  ;;  %v3194_v35 = vsel %vm82_vm0, %v3190_v28, 0.0  ;;  %4472 = vmatpush1.bf16.msra.mxu0 %v4471_v43  ;;  %v39_v37 = vld [vmem:[%s6129_s2 + $0x68] sm:$0xff]  ;;  %v4481_v36 = vpack.c.bf16 %v47_v63, %v45_v12  ;;  %v4483_v60 = vpack.c.bf16 %v46_v3, %v44_v44  ;;  %v3427_v14 = vld [vmem:[%s6131_s4 + $0x80] sm:$0xff]  ;;  %v3429_v4 = vld [vmem:[%s6131_s4 + $0x90] sm:$0xff] }
 0x626   :  { %3195 = vadd.xlane.f32.xlu1 %v3194_v35  ;;  %v3193_v51 = vadd.f32 %v4841_v39, %v3189_v46  ;;  %v4473_v33 = vpack.c.bf16 %v39_v37, %v37_v32  ;;  %v3411_v48 = vld [vmem:[%s6131_s4] sm:$0xff]  ;;  %v3430_v46 = vld [vmem:[%s6131_s4 + $0x98] sm:$0xff]  ;;  %v3413_v39 = vld [vmem:[%s6131_s4 + $0x10] sm:$0xff]  ;;  %v4507_v32 = vpack.c.bf16 %v3422_v38, %v3421_v56 }
 0x627   :  { %v3192_v40 = vadd.f32 %v4842_v61, %v3188_v41  ;;  %v4489_v35 = vpack.c.bf16 %v3430_v46, %v3429_v4  ;;  %v3431_v61 = vld [vmem:[%s6131_s4 + $0xa0] sm:$0xff]  ;;  %v3440_v43 = vld [vmem:[%s6131_s4 + $0xe8] sm:$0xff]  ;;  %v3425_v56 = vld [vmem:[%s6131_s4 + $0x70] sm:$0xff] }
 0x628   :  { %v3203_v6 = vsel %vm82_vm0, %v3193_v51, 0.0  ;;  %4474 = vmatprep.subr.bf16.mxu0 %v4473_v33  ;;  %v3439_v0 = vld [vmem:[%s6131_s4 + $0xe0] sm:$0xff]  ;;  %v3426_v38 = vld [vmem:[%s6131_s4 + $0x78] sm:$0xff] }
 0x629   :  { %v3200_v57 = vsel %vm82_vm0, %v3192_v40, 0.0  ;;  %4476 = vmatpush1.bf16.msra.mxu0 %v4475_v20  ;;  %v4509_v37 = vpack.c.bf16 %v3440_v43, %v3439_v0  ;;  %v4515_v0 = vpack.c.bf16 %v3426_v38, %v3425_v56  ;;  %v3652_v43 = vld [vmem:[%s6132_s5 + $0x1] ss:$4 sm:$0x3] }
 0x62a   :  { %3204 = vadd.xlane.f32.xlu1 %v3203_v6  ;;  %3201 = vadd.xlane.f32.xlu0 %v3200_v57 }
 0x62b   :  { %4478 = vmatprep.subr.bf16.mxu0 %v4477_v5 }
 0x62d   :  { %4480 = vmatpush1.bf16.msra.mxu0 %v4479_v62 }
 0x62e   :  { %4482 = vmatprep.subr.bf16.mxu0 %v4481_v36 }
 0x631   :  { %4484 = vmatpush1.bf16.msra.mxu0 %v4483_v60 }
 0x6b2   :  { %v3199_v49 = vpop.xlane.xlu0 %3198 }
 0x6b3   :  { %v3208_v18 = vmul.f32 0.015625, %v3199_v49  ;;  %v3196_v22 = vpop.xlane.xlu1 %3195  ;;  %v3415_v49 = vld [vmem:[%s6131_s4 + $0x20] sm:$0xff] }
 0x6b4   :  { %v3207_v21 = vmul.f32 0.015625, %v3196_v22  ;;  %v3433_v22 = vld [vmem:[%s6131_s4 + $0xb0] sm:$0xff] }
 0x6b5   :  { %v5860_v24 = vsub.f32 %v3191_v50, %v3208_v18  ;;  %v3428_v50 = vld [vmem:[%s6131_s4 + $0x88] sm:$0xff] }
 0x6b6   :  { %v5862_v10 = vsub.f32 %v3190_v28, %v3207_v21  ;;  %v4485_v27 = vpack.c.bf16 %v3428_v50, %v3427_v14  ;;  %v3412_v28 = vld [vmem:[%s6131_s4 + $0x8] sm:$0xff]  ;;  %v3434_v21 = vld [vmem:[%s6131_s4 + $0xb8] sm:$0xff] }
 0x6b7   :  { %v3205_v11 = vpop.xlane.xlu1 %3204  ;;  %v3202_v53 = vpop.xlane.xlu0 %3201  ;;  %v3216_v55 = vmul.f32 %v5860_v24, %v5860_v24  ;;  %v4487_v41 = vpack.c.bf16 %v3412_v28, %v3411_v48  ;;  %v3416_v18 = vld [vmem:[%s6131_s4 + $0x28] sm:$0xff] }
 0x6b8   :  { %v3210_v52 = vmul.f32 0.015625, %v3205_v11  ;;  %v3209_v45 = vmul.f32 0.015625, %v3202_v53  ;;  %v3215_v15 = vmul.f32 %v5862_v10, %v5862_v10  ;;  %4486 = vmatprep.subr.bf16.mxu1 %v4485_v27  ;;  %v4495_v11 = vpack.c.bf16 %v3416_v18, %v3415_v49 }
 0x6b9   :  { %v3222_v9 = vsel %vm82_vm0, %v3216_v55, 0.0  ;;  %4488 = vmatpush3.bf16.msra.mxu1 %v4487_v41  ;;  %v4497_v53 = vpack.c.bf16 %v3434_v21, %v3433_v22  ;;  %v3417_v55 = vld [vmem:[%s6131_s4 + $0x30] sm:$0xff] }
 0x6ba   :  { %v5869_v26 = vsub.f32 %v3193_v51, %v3210_v52  ;;  %v5871_v42 = vsub.f32 %v3192_v40, %v3209_v45  ;;  %3223 = vadd.xlane.f32.xlu1 %v3222_v9  ;;  %v3219_v59 = vsel %vm82_vm0, %v3215_v15, 0.0  ;;  %v3414_v51 = vld [vmem:[%s6131_s4 + $0x18] sm:$0xff]  ;;  %v3432_v40 = vld [vmem:[%s6131_s4 + $0xa8] sm:$0xff]  ;;  %4490 = vmatprep.subr.bf16.mxu1 %v4489_v35  ;;  %v3435_v45 = vld [vmem:[%s6131_s4 + $0xc0] sm:$0xff] }
 0x6bb   :  { %3220 = vadd.xlane.f32.xlu0 %v3219_v59  ;;  %v4491_v6 = vpack.c.bf16 %v3414_v51, %v3413_v39  ;;  %v4493_v57 = vpack.c.bf16 %v3432_v40, %v3431_v61  ;;  %v3418_v52 = vld [vmem:[%s6131_s4 + $0x38] sm:$0xff]  ;;  %v3436_v15 = vld [vmem:[%s6131_s4 + $0xc8] sm:$0xff] }
 0x6bc   :  { %v3218_v19 = vmul.f32 %v5869_v26, %v5869_v26  ;;  %v3217_v13 = vmul.f32 %v5871_v42, %v5871_v42  ;;  %v4499_v9 = vpack.c.bf16 %v3418_v52, %v3417_v55  ;;  %v4501_v59 = vpack.c.bf16 %v3436_v15, %v3435_v45 }
 0x6bd   :  { %4492 = vmatpush3.bf16.msra.mxu1 %v4491_v6 }
 0x6be   :  { %v3228_v58 = vsel %vm82_vm0, %v3218_v19, 0.0  ;;  %v3225_v17 = vsel %vm82_vm0, %v3217_v13, 0.0  ;;  %4494 = vmatprep.subr.bf16.mxu1 %v4493_v57  ;;  %v3419_v19 = vld [vmem:[%s6131_s4 + $0x40] sm:$0xff]  ;;  %v3420_v13 = vld [vmem:[%s6131_s4 + $0x48] sm:$0xff] }
 0x6bf   :  { %3229 = vadd.xlane.f32.xlu1 %v3228_v58  ;;  %3226 = vadd.xlane.f32.xlu0 %v3225_v17  ;;  %v3437_v58 = vld [vmem:[%s6131_s4 + $0xd0] sm:$0xff]  ;;  %v3438_v17 = vld [vmem:[%s6131_s4 + $0xd8] sm:$0xff]  ;;  %v4503_v54 = vpack.c.bf16 %v3420_v13, %v3419_v19 }
 0x6c0   :  { %v4505_v2 = vpack.c.bf16 %v3438_v17, %v3437_v58 }
 0x6c1   :  { %4496 = vmatpush3.bf16.msra.mxu1 %v4495_v11 }
 0x6c2   :  { %4498 = vmatprep.subr.bf16.mxu1 %v4497_v53 }
 0x6c5   :  { %4500 = vmatpush3.bf16.msra.mxu1 %v4499_v9 }
 0x6c6   :  { %4502 = vmatprep.subr.bf16.mxu1 %v4501_v59 }
 0x6c9   :  { %4504 = vmatpush3.bf16.msra.mxu1 %v4503_v54  ;;  %v3441_v54 = vld [vmem:[%s6131_s4 + $0xf0] sm:$0xff] }
 0x6ca   :  { %4506 = vmatprep.subr.bf16.mxu1 %v4505_v2 }
 0x6cd   :  { %4508 = vmatpush3.bf16.msra.mxu1 %v4507_v32  ;;  %v3295_v32 = vrot.slane %v3652_v43, %v74_v31 }
 0x6ce   :  { %4510 = vmatprep.subr.bf16.mxu1 %v4509_v37  ;;  %v3299_v37 = vrot.slane %v3652_v43, %v78_v34 }
 0x6d5   :  { %3284 = vrot.lane.b32.xlu0 %v5883_v8, %s4875_s22 }
 0x747   :  { %v3224_v23 = vpop.xlane.xlu1 %3223 }
 0x748   :  { %v3232_v33 = vmul.f32 0.015873017, %v3224_v23  ;;  %v3221_v1 = vpop.xlane.xlu0 %3220 }
 0x749   :  { %v3231_v25 = vmul.f32 0.015873017, %v3221_v1 }
 0x74a   :  { %4807 = vrsqrt.f32 %v3232_v33  ;;  %vm3244_vm4 = vcmp.eq.f32.partialorder %v3232_v33, inf  ;;  %v3247_v62 = vand.u32 2147483648, %v3232_v33  ;;  %vm3246_vm5 = vcmp.eq.f32.partialorder %v3232_v33, 0.0 }
 0x74b   :  { %4809 = vrsqrt.f32 %v3231_v25  ;;  %vm3237_vm6 = vcmp.eq.f32.partialorder %v3231_v25, inf  ;;  %v3240_v3 = vand.u32 2147483648, %v3231_v25  ;;  %vm3239_vm7 = vcmp.eq.f32.partialorder %v3231_v25, 0.0 }
 0x74c   :  { %v3230_v16 = vpop.xlane.xlu1 %3229  ;;  %v3227_v20 = vpop.xlane.xlu0 %3226 }
 0x74d   :  { %v3234_v5 = vmul.f32 0.015873017, %v3230_v16  ;;  %v3233_v47 = vmul.f32 0.015873017, %v3227_v20 }
 0x74f   :  { %4811 = vrsqrt.f32 %v3234_v5  ;;  %vm3258_vm8 = vcmp.eq.f32.partialorder %v3234_v5, inf  ;;  %vm3260_vm9 = vcmp.eq.f32.partialorder %v3234_v5, 0.0  ;;  %v3261_v41 = vand.u32 2147483648, %v3234_v5 }
 0x750   :  { %4813 = vrsqrt.f32 %v3233_v47  ;;  %vm3251_vm10 = vcmp.eq.f32.partialorder %v3233_v47, inf  ;;  %v3254_v51 = vand.u32 2147483648, %v3233_v47  ;;  %vm3253_vm11 = vcmp.eq.f32.partialorder %v3233_v47, 0.0  ;;  %v3285_v53 = vpop.permute.xlu0 %3284 }
 0x754   :  { %v4808_v29 = vpop.eup %4807 }
 0x755   :  { %v4810_v12 = vpop.eup %4809  ;;  %v3243_v63 = vmul.f32 %v4808_v29, %v3232_v33 }
 0x756   :  { %v3236_v36 = vmul.f32 %v4810_v12, %v3231_v25 }
 0x757   :  { %v3245_v44 = vsel %vm3244_vm4, %v3232_v33, %v3243_v63 }
 0x758   :  { %v3248_v60 = vsel %vm3246_vm5, %v3247_v62, %v3245_v44  ;;  %v3238_v14 = vsel %vm3237_vm6, %v3231_v25, %v3236_v36 }
 0x759   :  { %v4812_v50 = vpop.eup %4811  ;;  %v3264_v48 = vadd.f32 1e-06, %v3248_v60  ;;  %v3241_v27 = vsel %vm3239_vm7, %v3240_v3, %v3238_v14 }
 0x75a   :  { %v4814_v28 = vpop.eup %4813  ;;  %v3263_v4 = vadd.f32 1e-06, %v3241_v27  ;;  %v3257_v46 = vmul.f32 %v4812_v50, %v3234_v5 }
 0x75b   :  { %v3250_v35 = vmul.f32 %v4814_v28, %v3233_v47  ;;  %4815 = vrcp.f32 %v3264_v48 }
 0x75c   :  { %v3259_v39 = vsel %vm3258_vm8, %v3234_v5, %v3257_v46  ;;  %4817 = vrcp.f32 %v3263_v4  ;;  %v3791_v46 = vld [vmem:[%s6132_s5 + $0x2] ss:$0 sm:$0xff] }
 0x75d   :  { %v3262_v61 = vsel %vm3260_vm9, %v3261_v41, %v3259_v39  ;;  %v3252_v40 = vsel %vm3251_vm10, %v3233_v47, %v3250_v35 }
 0x75e   :  { %v3266_v6 = vadd.f32 1e-06, %v3262_v61  ;;  %v3255_v57 = vsel %vm3253_vm11, %v3254_v51, %v3252_v40 }
 0x75f   :  { %v3265_v49 = vadd.f32 1e-06, %v3255_v57 }
 0x761   :  { %4819 = vrcp.f32 %v3265_v49 }
 0x762   :  { %4821 = vrcp.f32 %v3266_v6 }
 0x765   :  { %v4816_v18 = vpop.eup %4815 }
 0x766   :  { %v4818_v22 = vpop.eup %4817  ;;  %v3272_v11 = vmul.f32 %v4816_v18, %v5860_v24 }
 0x767   :  { %v3271_v21 = vmul.f32 %v4818_v22, %v5862_v10 }
 0x768   :  { %v3280_v45 = vmul.f32 %v5883_v8, %v3272_v11 }
 0x769   :  { %v3279_v55 = vmul.f32 %v5883_v8, %v3271_v21 }
 0x76a   :  { %v6025_v19 = vadd.f32 %v3285_v53, %v3280_v45 }
 0x76b   :  { %v4820_v52 = vpop.eup %4819  ;;  %v6017_v15 = vadd.f32 %v3285_v53, %v3279_v55 }
 0x76c   :  { %v4822_v9 = vpop.eup %4821  ;;  %v3273_v59 = vmul.f32 %v4820_v52, %v5871_v42 }
 0x76d   :  { %3787 = vmatmul.mubr.msk.f32.vlgmr.msra.gmra.mrb[56].mxu0 %vm82_vm0, %v6017_v15  ;;  %v3274_v10 = vmul.f32 %v4822_v9, %v5869_v26  ;;  %v3423_v26 = vld [vmem:[%s6131_s4 + $0x60] sm:$0xff] }
 0x76e   :  { %3384 = vmatprep.mubr.f32.mxu0 %v4867_v7  ;;  %v3281_v24 = vmul.f32 %v5883_v8, %v3273_v59 }
 0x76f   :  { %v3282_v13 = vmul.f32 %v5883_v8, %v3274_v10  ;;  %v3424_v8 = vld [vmem:[%s6131_s4 + $0x68] sm:$0xff] }
 0x770   :  { %v6031_v58 = vadd.f32 %v3285_v53, %v3281_v24  ;;  %v4511_v17 = vpack.c.bf16 %v3424_v8, %v3423_v26 }
 0x771   :  { %3788 = vmatmul.mubr.msk.f32.gmra.mrb[58].mxu0 %vm82_vm0, %v6025_v19  ;;  %v6036_v42 = vadd.f32 %v3285_v53, %v3282_v13 }
 0x772   :  { %3390 = vmatprep.mubr.f32.mxu0 %v4867_v7  ;;  %4512 = vmatpush3.bf16.msra.mxu1 %v4511_v17 }
 0x775   :  { %3789 = vmatmul.mubr.msk.f32.gmra.mrb[60].mxu0 %vm82_vm0, %v6031_v58 }
 0x776   :  { %3396 = vmatprep.mubr.f32.mxu0 %v4867_v7  ;;  %v3442_v7 = vld [vmem:[%s6131_s4 + $0xf8] sm:$0xff] }
 0x777   :  { %v4513_v2 = vpack.c.bf16 %v3442_v7, %v3441_v54 }
 0x779   :  { %3790 = vmatmul.mubr.msk.f32.gmra.mrb[62].mxu0 %vm82_vm0, %v6036_v42  ;;  %4514 = vmatprep.subr.bf16.mxu1 %v4513_v2 }
 0x77a   :  { %4516 = vmatpush3.bf16.msra.mxu1 %v4515_v0 }
 0x840   :  { %v3380_v23 = vpop.f32.mrb[56].mxu0 }
 0x841   :  { %v3381_v33 = vadd.f32 %v3380_v23, %v3295_v32  ;;  %v3382_v1 = vpop.f32.mrb[57].mxu0 }
 0x842   :  { %v3383_v25 = vadd.f32 %v3382_v1, %v3299_v37 }
 0x843   :  { %v3403_v5 = vmax.f32 %v3381_v33, 0.0 }
 0x844   :  { %v3404_v16 = vmax.f32 %v3383_v25, 0.0  ;;  %v3386_v20 = vpop.f32.mrb[58].mxu0 }
 0x845   :  { %v3387_v47 = vadd.f32 %v3386_v20, %v3295_v32  ;;  %v3388_v29 = vpop.f32.mrb[59].mxu0  ;;  %v6099_v20 = vld [vmem:[%s6132_s5 + $0x7] ss:$0 sm:$0xff]  ;;  %s4876_s5 = smov [#allocation2]  }
 0x846   :  { %v3389_v12 = vadd.f32 %v3388_v29, %v3299_v37  ;;  %3511 = vmatprep.mubr.f32.mxu1 %v3404_v16 }
 0x847   :  { %3512 = vmatmul.mubr.f32.vlgmr.msra.gmra.mrb[48].mxu1 %v3403_v5  ;;  %v3405_v36 = vmax.f32 %v3387_v47, 0.0 }
 0x848   :  { %v3406_v63 = vmax.f32 %v3389_v12, 0.0  ;;  %v3392_v62 = vpop.f32.mrb[60].mxu0 }
 0x849   :  { %v3393_v44 = vadd.f32 %v3392_v62, %v3295_v32  ;;  %v3394_v31 = vpop.f32.mrb[61].mxu0 }
 0x84a   :  { %v3395_v3 = vadd.f32 %v3394_v31, %v3299_v37  ;;  %3516 = vmatprep.mubr.f32.mxu1 %v3406_v63 }
 0x84b   :  { %3517 = vmatmul.mubr.f32.gmra.mrb[50].mxu1 %v3405_v36  ;;  %v3407_v60 = vmax.f32 %v3393_v44, 0.0 }
 0x84c   :  { %v3408_v30 = vmax.f32 %v3395_v3, 0.0  ;;  %v3398_v34 = vpop.f32.mrb[62].mxu0 }
 0x84d   :  { %v3399_v14 = vadd.f32 %v3398_v34, %v3295_v32  ;;  %v3400_v50 = vpop.f32.mrb[63].mxu0 }
 0x84e   :  { %v3401_v48 = vadd.f32 %v3400_v50, %v3299_v37  ;;  %3521 = vmatprep.mubr.f32.mxu1 %v3408_v30 }
 0x84f   :  { %3522 = vmatmul.mubr.f32.gmra.mrb[52].mxu1 %v3407_v60  ;;  %v3409_v28 = vmax.f32 %v3399_v14, 0.0 }
 0x850   :  { %v3410_v27 = vmax.f32 %v3401_v48, 0.0 }
 0x852   :  { %3526 = vmatprep.mubr.f32.mxu1 %v3410_v27 }
 0x853   :  { %3527 = vmatmul.mubr.f32.gmra.mrb[54].mxu1 %v3409_v28 }
 0x91a   :  { %v3993_v4 = vpop.f32.mrb[48].mxu1 }
 0x91b   :  { %v3994_v41 = vpop.f32.mrb[49].mxu1 }
 0x91c   :  { %v3995_v35 = vadd.f32 %v3994_v41, %v3993_v4 }
 0x91e   :  { %v3514_v39 = vadd.f32 %v3995_v35, %v3791_v46  ;;  %v3996_v51 = vpop.f32.mrb[50].mxu1 }
 0x91f   :  { %v3997_v61 = vpop.f32.mrb[51].mxu1 }
 0x920   :  { %v3998_v40 = vadd.f32 %v3997_v61, %v3996_v51  ;;  %v3532_v6 = vadd.f32 %v3514_v39, %v6017_v15 }
 0x922   :  { %v3519_v57 = vadd.f32 %v3998_v40, %v3791_v46  ;;  %v3999_v49 = vpop.f32.mrb[52].mxu1  ;;  %v3536_v18 = vsel %vm82_vm0, %v3532_v6, 0.0 }
 0x923   :  { %v4000_v22 = vpop.f32.mrb[53].mxu1  ;;  %3537 = vadd.xlane.f32.xlu1 %v3536_v18 }
 0x924   :  { %v4001_v21 = vadd.f32 %v4000_v22, %v3999_v49  ;;  %v3533_v11 = vadd.f32 %v3519_v57, %v6025_v19 }
 0x926   :  { %v3524_v53 = vadd.f32 %v4001_v21, %v3791_v46  ;;  %v4002_v55 = vpop.f32.mrb[54].mxu1  ;;  %v3539_v52 = vsel %vm82_vm0, %v3533_v11, 0.0 }
 0x927   :  { %v4003_v45 = vpop.f32.mrb[55].mxu1  ;;  %3540 = vadd.xlane.f32.xlu1 %v3539_v52 }
 0x928   :  { %v4004_v9 = vadd.f32 %v4003_v45, %v4002_v55  ;;  %v3534_v59 = vadd.f32 %v3524_v53, %v6031_v58 }
 0x92a   :  { %v3529_v10 = vadd.f32 %v4004_v9, %v3791_v46  ;;  %v3542_v15 = vsel %vm82_vm0, %v3534_v59, 0.0 }
 0x92b   :  { %3543 = vadd.xlane.f32.xlu1 %v3542_v15 }
 0x92c   :  { %v3535_v24 = vadd.f32 %v3529_v10, %v6036_v42 }
 0x92e   :  { %v3545_v13 = vsel %vm82_vm0, %v3535_v24, 0.0 }
 0x92f   :  { %3546 = vadd.xlane.f32.xlu1 %v3545_v13 }
 0x9b0   :  { %v3538_v26 = vpop.xlane.xlu1 %3537 }
 0x9b1   :  { %v3548_v19 = vmul.f32 0.015625, %v3538_v26 }
 0x9b3   :  { %v6076_v8 = vsub.f32 %v3532_v6, %v3548_v19 }
 0x9b4   :  { %v3541_v17 = vpop.xlane.xlu1 %3540 }
 0x9b5   :  { %v3549_v54 = vmul.f32 0.015625, %v3541_v17  ;;  %v3556_v7 = vmul.f32 %v6076_v8, %v6076_v8 }
 0x9b7   :  { %v6080_v2 = vsub.f32 %v3533_v11, %v3549_v54  ;;  %v3560_v58 = vsel %vm82_vm0, %v3556_v7, 0.0 }
 0x9b8   :  { %3561 = vadd.xlane.f32.xlu1 %v3560_v58  ;;  %v3544_v56 = vpop.xlane.xlu1 %3543 }
 0x9b9   :  { %v3550_v38 = vmul.f32 0.015625, %v3544_v56  ;;  %v3557_v42 = vmul.f32 %v6080_v2, %v6080_v2 }
 0x9bb   :  { %v6085_v0 = vsub.f32 %v3534_v59, %v3550_v38  ;;  %v3563_v43 = vsel %vm82_vm0, %v3557_v42, 0.0 }
 0x9bc   :  { %3564 = vadd.xlane.f32.xlu1 %v3563_v43  ;;  %v3547_v32 = vpop.xlane.xlu1 %3546 }
 0x9bd   :  { %v3551_v37 = vmul.f32 0.015625, %v3547_v32  ;;  %v3558_v23 = vmul.f32 %v6085_v0, %v6085_v0 }
 0x9bf   :  { %v6090_v33 = vsub.f32 %v3535_v24, %v3551_v37  ;;  %v3566_v1 = vsel %vm82_vm0, %v3558_v23, 0.0 }
 0x9c0   :  { %3567 = vadd.xlane.f32.xlu0 %v3566_v1 }
 0x9c1   :  { %v3559_v25 = vmul.f32 %v6090_v33, %v6090_v33 }
 0x9c3   :  { %v3569_v16 = vsel %vm82_vm0, %v3559_v25, 0.0 }
 0x9c4   :  { %3570 = vadd.xlane.f32.xlu1 %v3569_v16 }
 0x9d5   :  { %3625 = vrot.lane.b32.xlu1 %v6099_v20, %s4875_s22  ;;  %s3641_s22 = sshll.u32 %s4876_s5, 4  ;;  %s3642_s22 = int_to_ptr.vmem [resolvable:$true] %s3641_s22 }
 0x9d6   :  { %s4843_s28 = scalar_lea.vmem %s3642_s22, 512  ;;  %p4848_p1 = scmp.lt.s32.totalorder %s3642_s22, %s3642_s22 }
 0x9d7   :  { %p4844_p0 = scmp.ne.s32.totalorder %s3642_s22, %s4843_s28  ;;  %p4849_p2 = scmp.lt.s32.totalorder %s4843_s28, %s4843_s28 }
 0x9d9   :  { %p4850_p3 = por %p4849_p2, %p4848_p1 }
 0x9db   :  { %p4851_p4 = pnand %p4850_p3, %p4844_p0 }
 0xa45   :  { %v3562_v5 = vpop.xlane.xlu1 %3561 }
 0xa46   :  { %v3572_v47 = vmul.f32 0.015873017, %v3562_v5 }
 0xa48   :  { %4823 = vrsqrt.f32 %v3572_v47  ;;  %vm3578_vm12 = vcmp.eq.f32.partialorder %v3572_v47, inf  ;;  %v3581_v30 = vand.u32 2147483648, %v3572_v47  ;;  %vm3580_vm13 = vcmp.eq.f32.partialorder %v3572_v47, 0.0 }
 0xa49   :  { %v3565_v29 = vpop.xlane.xlu1 %3564 }
 0xa4a   :  { %v3573_v12 = vmul.f32 0.015873017, %v3565_v29 }
 0xa4c   :  { %4825 = vrsqrt.f32 %v3573_v12  ;;  %vm3585_vm14 = vcmp.eq.f32.partialorder %v3573_v12, inf  ;;  %v3588_v27 = vand.u32 2147483648, %v3573_v12  ;;  %vm3587_vm15 = vcmp.eq.f32.partialorder %v3573_v12, 0.0 }
 0xa4d   :  { %v3568_v63 = vpop.xlane.xlu0 %3567 }
 0xa4e   :  { %v3574_v62 = vmul.f32 0.015873017, %v3568_v63 }
 0xa50   :  { %4827 = vrsqrt.f32 %v3574_v62  ;;  %vm3592_vm1 = vcmp.eq.f32.partialorder %v3574_v62, inf  ;;  %v3595_v39 = vand.u32 2147483648, %v3574_v62  ;;  %vm3594_vm2 = vcmp.eq.f32.partialorder %v3574_v62, 0.0 }
 0xa51   :  { %v3571_v36 = vpop.xlane.xlu1 %3570 }
 0xa52   :  { %v4824_v44 = vpop.eup %4823  ;;  %v3575_v31 = vmul.f32 0.015873017, %v3571_v36 }
 0xa53   :  { %v3577_v3 = vmul.f32 %v4824_v44, %v3572_v47 }
 0xa54   :  { %4829 = vrsqrt.f32 %v3575_v31  ;;  %vm3599_vm3 = vcmp.eq.f32.partialorder %v3575_v31, inf  ;;  %v3602_v49 = vand.u32 2147483648, %v3575_v31  ;;  %vm3601_vm4 = vcmp.eq.f32.partialorder %v3575_v31, 0.0 }
 0xa55   :  { %v3579_v34 = vsel %vm3578_vm12, %v3572_v47, %v3577_v3  ;;  %v3626_v55 = vpop.permute.xlu1 %3625 }
 0xa56   :  { %v4826_v60 = vpop.eup %4825  ;;  %v3582_v14 = vsel %vm3580_vm13, %v3581_v30, %v3579_v34 }
 0xa57   :  { %v3584_v50 = vmul.f32 %v4826_v60, %v3573_v12  ;;  %v3604_v48 = vadd.f32 1e-06, %v3582_v14 }
 0xa59   :  { %v3586_v28 = vsel %vm3585_vm14, %v3573_v12, %v3584_v50  ;;  %4831 = vrcp.f32 %v3604_v48 }
 0xa5a   :  { %v4828_v4 = vpop.eup %4827  ;;  %v3589_v46 = vsel %vm3587_vm15, %v3588_v27, %v3586_v28 }
 0xa5b   :  { %v3591_v41 = vmul.f32 %v4828_v4, %v3574_v62  ;;  %v3605_v35 = vadd.f32 1e-06, %v3589_v46 }
 0xa5d   :  { %v3593_v51 = vsel %vm3592_vm1, %v3574_v62, %v3591_v41  ;;  %4833 = vrcp.f32 %v3605_v35 }
 0xa5e   :  { %v4830_v61 = vpop.eup %4829  ;;  %v3596_v40 = vsel %vm3594_vm2, %v3595_v39, %v3593_v51 }
 0xa5f   :  { %v3598_v6 = vmul.f32 %v4830_v61, %v3575_v31  ;;  %v3606_v57 = vadd.f32 1e-06, %v3596_v40 }
 0xa61   :  { %v3600_v18 = vsel %vm3599_vm3, %v3575_v31, %v3598_v6  ;;  %4835 = vrcp.f32 %v3606_v57 }
 0xa62   :  { %v3603_v22 = vsel %vm3601_vm4, %v3602_v49, %v3600_v18 }
 0xa63   :  { %v4832_v21 = vpop.eup %4831  ;;  %v3607_v11 = vadd.f32 1e-06, %v3603_v22 }
 0xa64   :  { %v3612_v53 = vmul.f32 %v4832_v21, %v6076_v8 }
 0xa65   :  { %4837 = vrcp.f32 %v3607_v11 }
 0xa66   :  { %v3620_v52 = vmul.f32 %v6099_v20, %v3612_v53 }
 0xa67   :  { %v4834_v45 = vpop.eup %4833 }
 0xa68   :  { %v3613_v9 = vmul.f32 %v4834_v45, %v6080_v2  ;;  %v3628_v59 = vadd.f32 %v3626_v55, %v3620_v52 }
 0xa6a   :  { %v3621_v10 = vmul.f32 %v6099_v20, %v3613_v9  ;;  %3632 = vst.msk [vmem:[#allocation2] sm:$0xff] %vm82_vm0, %v3628_v59 }
 0xa6b   :  { %v4836_v15 = vpop.eup %4835 }
 0xa6c   :  { %v3614_v24 = vmul.f32 %v4836_v15, %v6085_v0  ;;  %v3629_v13 = vadd.f32 %v3626_v55, %v3621_v10 }
 0xa6e   :  { %v3622_v26 = vmul.f32 %v6099_v20, %v3614_v24  ;;  %3633 = vst.msk [vmem:[#allocation2 + $0x8] sm:$0xff] %vm82_vm0, %v3629_v13 }
 0xa6f   :  { %v4838_v19 = vpop.eup %4837 }
 0xa70   :  { %v3615_v8 = vmul.f32 %v4838_v19, %v6090_v33  ;;  %v3630_v17 = vadd.f32 %v3626_v55, %v3622_v26 }
 0xa72   :  { %v3623_v54 = vmul.f32 %v6099_v20, %v3615_v8  ;;  %3634 = vst.msk [vmem:[#allocation2 + $0x10] sm:$0xff] %vm82_vm0, %v3630_v17 }
 0xa74   :  { %v3631_v7 = vadd.f32 %v3626_v55, %v3623_v54 }
 0xa76   :  { %3635 = vst.msk [vmem:[#allocation2 + $0x18] sm:$0xff] %vm82_vm0, %v3631_v7 }
 0xa77   :  { %4854 = shalt.err (!%p4851_p4)
}
 0xa78   :  { %s4855_s1 = scalar_lea.hbm %s6133_s6, 512 }
 0xa79   :  { %p4856_p5 = scmp.ne.s32.totalorder %s6133_s6, %s4855_s1  ;;  %p4859_p6 = scmp.lt.u32.totalorder %s4855_s1, %s6133_s6 }
 0xa7b   :  { %p4861_p7 = pnand %p4859_p6, %p4856_p5 }
 0xa7d   :  { %4864 = shalt.err (!%p4861_p7)
}
 0xa7e   :  { %s4877_s10 = smov 128   ;;  %s4878_s11 = smov 8  }
 0xa7f   :  { %3647 = dma.vmem_to_hbm [thread:$0]  %s3642_s22, 512, %s6133_s6, [#allocation3], %s4877_s10, %s4877_s10, %s4878_s11  }
 0xa80   :  { %4865 = dma.done.wait [#allocation3], 512  }
 0xa81   :  { %4866 = vsyncadd [#allocation3], 4294966784 }
 0xa82   :  { %3651 = vsyncpa [#allocation3], 1 }

</bundles_post_ra>
